<compile_context>
chip_gen: v7x
topology: tpu7x:2x2x1
jax: 0.10.0
libtpu: 0.0.40
codegen_flags: <defaults>
</compile_context>

<pallas_src>
import functools

import jax
import jax.numpy as jnp
import numpy as np
from jax import lax
from jax.experimental import pallas as pl
from jax.experimental.pallas import tpu as pltpu

_BN_EPS = 1e-5
_ROW_TARGET = 512      # MXU row-fill target (256-row MXU on v6e/v7x; 4x v5e's 128)
_N1_TILE_MAX = 512     # cap so d[bt, n1_tile, N2] stays VMEM-friendly at large N2


def _setupconv_kernel(*refs, nsample, bt, n1t, n2, n_extra1, n_extra2, use_bf16):
    """One grid step processes `bt` batch elements x `n1t` dense points.

    Ref order (inputs..., output):
      xyz1 [bt,n1t,3], xyz2 [bt,N2,3], f1 [bt,n1t,C1], f2 [bt,N2,C2],
      w0x [3,M0], w0f [C2,M0], b0 [1,M0],
      (w_i, b_i) * n_extra1   (remaining mlp1 layers),
      w2a [M_last,M2], w2b [C1,M2], b2 [1,M2],
      (w_j, b_j) * n_extra2   (remaining mlp2 layers),
      out [bt,n1t,M_out]
    """
    out_ref = refs[-1]
    it = iter(refs[:-1])
    xyz1_ref, xyz2_ref, f1_ref, f2_ref = next(it), next(it), next(it), next(it)
    w0x_ref, w0f_ref, b0_ref = next(it), next(it), next(it)
    mlp1_extra = [(next(it), next(it)) for _ in range(n_extra1)]
    w2a_ref, w2b_ref, b2_ref = next(it), next(it), next(it)
    mlp2_extra = [(next(it), next(it)) for _ in range(n_extra2)]

    xyz1 = xyz1_ref[...]                       # [bt, n1t, 3]
    xyz2 = xyz2_ref[...]                       # [bt, N2, 3]
    f1 = f1_ref[...]                           # [bt, n1t, C1]
    f2 = f2_ref[...]                           # [bt, N2, C2]
    c1 = f1.shape[-1]
    c2 = f2.shape[-1]
    m0 = w0x_ref.shape[1]
    rows = bt * n1t
    sel_dtype = jnp.bfloat16 if use_bf16 else jnp.float32

    # Squared pairwise distances, per coordinate on the VPU (keeps the tiny dim-3
    # contraction off the MXU).  (x1 - x2)^2 form keeps d >= 0 by construction,
    # which the int32 key packing below relies on.
    d = jnp.zeros((bt, n1t, n2), jnp.float32)
    for c in range(3):
        diff = xyz1[:, :, c][:, :, None] - xyz2[:, :, c][:, None, :]
        d = d + diff * diff

    # KNN selection with ONE cross-lane reduction per k: pack (distance, column)
    # into a single sortable int32 key (non-negative f32 bit patterns are
    # order-preserving as int32; low bits carry the column index, so ties only
    # coarsen -- benign because the K results feed a max-pool over K).
    nbits = max(1, (n2 - 1).bit_length())
    lowmask = (1 << nbits) - 1
    col = lax.broadcasted_iota(jnp.int32, (bt, n1t, n2), 2)
    key = (pltpu.bitcast(d, jnp.int32) & ~lowmask) | col        # [bt, n1t, n2]

    # mlp1 layer 0 fused with the (deferred) neighbour gather (BN already folded):
    #   g_b    = xyz2_b @ W0_xyz + feat2_b @ W0_feat             [bt, N2, M0]
    #   pre_ik = g[idx(i,k)] + (b0 - xyz1_i @ W0_xyz)            (direction folded)
    w0x = w0x_ref[...]
    g = (jnp.dot(xyz2.reshape(bt * n2, 3), w0x, preferred_element_type=jnp.float32)
         + jnp.dot(f2.reshape(bt * n2, c2), w0f_ref[...],
                   preferred_element_type=jnp.float32)).reshape(bt, n2, m0)
    g_mx = g.astype(sel_dtype)                 # bf16 feed for the dominant MXU op
    base = (b0_ref[...] - jnp.dot(xyz1.reshape(rows, 3), w0x,
                                  preferred_element_type=jnp.float32)
            ).reshape(bt, n1t, m0)

    # Per-k loop: one-hot -> gather-matmul -> mlp1 tail -> running max-pool.
    # Nothing K-wide is ever materialized.
    pooled = None
    for k in range(nsample):
        minkey = jnp.min(key, axis=-1, keepdims=True)           # one XLU reduction
        idx = minkey & lowmask                                  # selected column
        sel = col == idx                                        # exact one-hot
        if k + 1 < nsample:
            key = jnp.where(sel, 2147483647, key)               # mask selected entry
        onehot = sel.astype(jnp.float32).astype(sel_dtype)      # exact 0/1 in bf16
        hk = jnp.einsum('bqn,bnd->bqd', onehot, g_mx,
                        preferred_element_type=jnp.float32)     # [bt, n1t, m0]
        hk = jnp.maximum(hk + base, 0.0).reshape(rows, m0)      # ReLU, flatten rows
        for w_ref, b_ref in mlp1_extra:                         # remaining mlp1 layers
            hk = jnp.maximum(
                jnp.dot(hk, w_ref[...], preferred_element_type=jnp.float32)
                + b_ref[...], 0.0)
        pooled = hk if pooled is None else jnp.maximum(pooled, hk)

    # mlp2 layer 0: channel-concat with feature1 realized as a split matmul.
    out = (jnp.dot(pooled, w2a_ref[...], preferred_element_type=jnp.float32)
           + jnp.dot(f1.reshape(rows, c1), w2b_ref[...],
                     preferred_element_type=jnp.float32)
           + b2_ref[...])
    out = jnp.maximum(out, 0.0)
    for w_ref, b_ref in mlp2_extra:
        out = jnp.maximum(
            jnp.dot(out, w_ref[...], preferred_element_type=jnp.float32)
            + b_ref[...], 0.0)

    out_ref[...] = out.reshape(bt, n1t, out.shape[-1])


def _fold_bn(w, gamma, beta, mean, var, eps=_BN_EPS):
    """Fold inference-mode BatchNorm into the preceding bias-free 1x1 conv.
    w: [Cout, Cin] -> (w_eff [Cin, Cout], b_eff [1, Cout])."""
    s = gamma / jnp.sqrt(var + eps)
    w_eff = (w * s[:, None]).T.astype(jnp.float32)
    b_eff = (beta - s * mean)[None, :].astype(jnp.float32)
    return w_eff, b_eff


def _divisors(n):
    return [d for d in range(1, n + 1) if n % d == 0]


def _pick_n1_tile(n1, max_tile=_N1_TILE_MAX):
    """Largest divisor of N1 that is <= max_tile and keeps the sublane dim legal
    (multiple of 8, or the full extent)."""
    cand = [d for d in _divisors(n1) if d <= max_tile and (d % 8 == 0 or d == n1)]
    return max(cand) if cand else n1


def _pick_batch_tile(batch, n1_tile, row_target=_ROW_TARGET):
    """Smallest divisor of `batch` whose flattened MLP row count bt*n1_tile reaches
    the MXU row-fill target; falls back to the whole batch.  Smaller bt also means
    more grid steps, which keeps the block DMAs pipelined behind compute."""
    for bt in _divisors(batch):
        if bt * n1_tile >= row_target:
            return bt
    return batch


def _vmem_limit_bytes(bt, n1t, n2, c1, c2, widths1, widths2, use_bf16):
    """Derive vmem_limit_bytes from the actual block / intermediate sizes, capped
    against the physical VMEM of the current chip generation (128 MiB on v5e/v6e,
    64 MiB on v7x)."""
    f32 = 4
    sel = 2 if use_bf16 else 4
    m0 = widths1[0]
    wmax = max(widths1 + widths2)
    blocks = (bt * n1t * (3 + c1 + widths2[-1]) + bt * n2 * (3 + c2)) * f32
    dist = bt * n1t * n2 * (f32 + 4 + sel)      # d, int32 keys, one-hot
    gbuf = bt * n2 * m0 * (f32 + sel)           # g and its bf16 copy
    act = 4 * bt * n1t * wmax * f32             # hk / pooled / out headroom
    est = 2 * blocks + dist + gbuf + act        # blocks are double-buffered
    try:
        phys = pltpu.get_tpu_info().vmem_capacity_bytes
    except Exception:
        phys = 128 * 1024 * 1024
    return int(min(max(2 * est, 32 * 1024 * 1024), 0.75 * phys))


def pointnet_setupconv(pos1, pos2, feat1, feat2, params, nsample,
                       bt=None, n1_tile=None, use_bf16=True):
    """pos1 [B,3,N1], pos2 [B,3,N2], feat1 [B,C1,N1], feat2 [B,C2,N2]
       -> [B, mlp2[-1], N1]  (PointNetSetUpConv.forward, knn=True, eval-mode BN)."""
    B, _, N1 = pos1.shape
    N2 = pos2.shape[2]
    C1 = feat1.shape[1]
    C2 = feat2.shape[1]
    assert nsample >= 1 and nsample <= N2, "need 1 <= nsample <= N2"
    assert len(params["mlp1"]) >= 1 and len(params["mlp2"]) >= 1

    if n1_tile is None:
        n1_tile = _pick_n1_tile(N1)
    if bt is None:
        bt = _pick_batch_tile(B, n1_tile)
    assert B % bt == 0 and N1 % n1_tile == 0

    # channels-last views (1x1 convs become plain [rows, Cin] @ [Cin, Cout] matmuls)
    xyz1_t = jnp.transpose(pos1, (0, 2, 1)).astype(jnp.float32)   # [B, N1, 3]
    xyz2_t = jnp.transpose(pos2, (0, 2, 1)).astype(jnp.float32)   # [B, N2, 3]
    f1_t = jnp.transpose(feat1, (0, 2, 1)).astype(jnp.float32)    # [B, N1, C1]
    f2_t = jnp.transpose(feat2, (0, 2, 1)).astype(jnp.float32)    # [B, N2, C2]

    mlp1 = [_fold_bn(l["w"], l["gamma"], l["beta"], l["mean"], l["var"])
            for l in params["mlp1"]]
    mlp2 = [_fold_bn(l["w"], l["gamma"], l["beta"], l["mean"], l["var"])
            for l in params["mlp2"]]

    # layer-0 weight split: input channel order is [direction_xyz(3), feature2(C2)]
    w0, b0 = mlp1[0]
    w0x, w0f = w0[:3], w0[3:]
    # mlp2 layer-0 weight split: input channel order is [mlp1 output, feature1(C1)]
    w2, b2 = mlp2[0]
    widths1 = [l["w"].shape[0] for l in params["mlp1"]]
    widths2 = [l["w"].shape[0] for l in params["mlp2"]]
    m_last, m_out = widths1[-1], widths2[-1]
    w2a, w2b = w2[:m_last], w2[m_last:]

    inputs = [xyz1_t, xyz2_t, f1_t, f2_t, w0x, w0f, b0]
    for w, b in mlp1[1:]:
        inputs += [w, b]
    inputs += [w2a, w2b, b2]
    for w, b in mlp2[1:]:
        inputs += [w, b]

    # 2-D fully parallel grid: batch tiles x N1 tiles.  xyz2/f2 blocks only depend on
    # the batch axis, so consecutive N1 steps reuse them; the N1 axis bounds the
    # [bt, n1_tile, N2] intermediates and lets v7x shard steps across both TCs.
    grid = (B // bt, N1 // n1_tile)
    in_specs = [
        pl.BlockSpec((bt, n1_tile, 3), lambda i, j: (i, j, 0)),
        pl.BlockSpec((bt, N2, 3), lambda i, j: (i, 0, 0)),
        pl.BlockSpec((bt, n1_tile, C1), lambda i, j: (i, j, 0)),
        pl.BlockSpec((bt, N2, C2), lambda i, j: (i, 0, 0)),
    ]
    in_specs += [pl.BlockSpec(a.shape, lambda i, j: (0, 0)) for a in inputs[4:]]

    kernel = functools.partial(
        _setupconv_kernel, nsample=nsample, bt=bt, n1t=n1_tile, n2=N2,
        n_extra1=len(mlp1) - 1, n_extra2=len(mlp2) - 1, use_bf16=use_bf16)

    out = pl.pallas_call(
        kernel,
        out_shape=jax.ShapeDtypeStruct((B, N1, m_out), jnp.float32),
        grid=grid,
        in_specs=in_specs,
        out_specs=pl.BlockSpec((bt, n1_tile, m_out), lambda i, j: (i, j, 0)),
        compiler_params=pltpu.CompilerParams(
            dimension_semantics=("parallel", "parallel"),
            vmem_limit_bytes=_vmem_limit_bytes(
                bt, n1_tile, N2, C1, C2, widths1, widths2, use_bf16)),
    )(*inputs)

    return jnp.transpose(out, (0, 2, 1))   # [B, mlp2[-1], N1]


def pointnet_setupconv_ref(pos1, pos2, feat1, feat2, params, nsample, eps=_BN_EPS):
    """Pure-JAX reference mirroring the PyTorch forward (eval-mode BN)."""
    pos1_t = jnp.transpose(pos1, (0, 2, 1))
    pos2_t = jnp.transpose(pos2, (0, 2, 1))
    f1_t = jnp.transpose(feat1, (0, 2, 1))
    f2_t = jnp.transpose(feat2, (0, 2, 1))

    d = (jnp.sum(pos1_t ** 2, -1)[:, :, None]
         + jnp.sum(pos2_t ** 2, -1)[:, None, :]
         - 2.0 * jnp.einsum('bnc,bmc->bnm', pos1_t, pos2_t))
    _, idx = lax.top_k(-d, nsample)                                   # [B, N1, K]

    gather = jax.vmap(lambda pts, ind: pts[ind])
    nb_xyz = gather(pos2_t, idx)                                      # [B,N1,K,3]
    nb_feat = gather(f2_t, idx)                                       # [B,N1,K,C2]
    direction = nb_xyz - pos1_t[:, :, None, :]
    x = jnp.concatenate([direction, nb_feat], axis=-1)                # [B,N1,K,3+C2]

    def conv_bn_relu(x, layer):
        y = jnp.einsum('...c,oc->...o', x, layer["w"])
        s = layer["gamma"] / jnp.sqrt(layer["var"] + eps)
        y = y * s + (layer["beta"] - s * layer["mean"])
        return jnp.maximum(y, 0.0)

    for layer in params["mlp1"]:
        x = conv_bn_relu(x, layer)
    x = jnp.max(x, axis=2)                                            # max over K
    x = jnp.concatenate([x, f1_t], axis=-1)
    for layer in params["mlp2"]:
        x = conv_bn_relu(x, layer)
    return jnp.transpose(x, (0, 2, 1))


def init_params(key, f1_channel, f2_channel, mlp, mlp2):
    n_layers = len(mlp) + len(mlp2)
    keys = iter(jax.random.split(key, 5 * n_layers))

    def make_layer(cin, cout):
        return {
            "w": 0.2 * jax.random.normal(next(keys), (cout, cin), jnp.float32),
            "gamma": 1.0 + 0.1 * jax.random.normal(next(keys), (cout,), jnp.float32),
            "beta": 0.1 * jax.random.normal(next(keys), (cout,), jnp.float32),
            "mean": 0.1 * jax.random.normal(next(keys), (cout,), jnp.float32),
            "var": jax.random.uniform(next(keys), (cout,), jnp.float32, 0.5, 1.5),
        }

    layers1, last = [], f2_channel + 3
    for cout in mlp:
        layers1.append(make_layer(last, cout))
        last = cout
    layers2, last = [], mlp[-1] + f1_channel
    for cout in mlp2:
        layers2.append(make_layer(last, cout))
        last = cout
    return {"mlp1": layers1, "mlp2": layers2}


if __name__ == "__main__":
    # PointNetSetUpConv(nsample=4, radius=*, f1_channel=16, f2_channel=16,
    #                   mlp=[32, 32], mlp2=[32], knn=True)
    B, N1, N2 = 2, 8, 32          # batch, dense points, sparse points
    C1, C2 = 16, 16               # f1_channel, f2_channel
    nsample = 4
    mlp, mlp2 = [32, 32], [32]

    key = jax.random.PRNGKey(0)
    k1, k2, k3, k4, kp = jax.random.split(key, 5)
    pos1 = jax.random.normal(k1, (B, 3, N1), jnp.float32)
    pos2 = jax.random.normal(k2, (B, 3, N2), jnp.float32)
    feat1 = jax.random.normal(k3, (B, C1, N1), jnp.float32)
    feat2 = jax.random.normal(k4, (B, C2, N2), jnp.float32)
    params = init_params(kp, C1, C2, mlp, mlp2)

    ref = jax.block_until_ready(
        pointnet_setupconv_ref(pos1, pos2, feat1, feat2, params, nsample))

    # Full-f32 path: bit-for-bit-ish match with the reference.
    out_f32 = jax.block_until_ready(
        pointnet_setupconv(pos1, pos2, feat1, feat2, params, nsample,
                           use_bf16=False))
    assert out_f32.shape == (B, mlp2[-1], N1), out_f32.shape
    np.testing.assert_allclose(np.asarray(out_f32), np.asarray(ref),
                               rtol=1e-4, atol=1e-4)

    # Default optimized path: bf16 feed on the dominant gather matmul (f32 accum);
    # tolerance relaxed accordingly (inference-grade precision).
    out_bf16 = jax.block_until_ready(
        pointnet_setupconv(pos1, pos2, feat1, feat2, params, nsample,
                           use_bf16=True))
    assert out_bf16.shape == (B, mlp2[-1], N1), out_bf16.shape
    np.testing.assert_allclose(np.asarray(out_bf16), np.asarray(ref),
                               rtol=5e-2, atol=5e-2)

    print("KERNEL_OK")
</pallas_src>

<mosaic_0001>
module attributes {stable_mosaic.version = 11 : i64} {
  func.func @_setupconv_kernel(%arg0: i32, %arg1: i32, %arg2: memref<2x8x3xf32, #tpu.memory_space<vmem>>, %arg3: memref<2x32x3xf32, #tpu.memory_space<vmem>>, %arg4: memref<2x8x16xf32, #tpu.memory_space<vmem>>, %arg5: memref<2x32x16xf32, #tpu.memory_space<vmem>>, %arg6: memref<3x32xf32, #tpu.memory_space<vmem>>, %arg7: memref<16x32xf32, #tpu.memory_space<vmem>>, %arg8: memref<1x32xf32, #tpu.memory_space<vmem>>, %arg9: memref<32x32xf32, #tpu.memory_space<vmem>>, %arg10: memref<1x32xf32, #tpu.memory_space<vmem>>, %arg11: memref<32x32xf32, #tpu.memory_space<vmem>>, %arg12: memref<16x32xf32, #tpu.memory_space<vmem>>, %arg13: memref<1x32xf32, #tpu.memory_space<vmem>>, %arg14: memref<2x8x32xf32, #tpu.memory_space<vmem>>) attributes {dimension_semantics = [#tpu.dimension_semantics<parallel>, #tpu.dimension_semantics<parallel>], iteration_bounds = array<i64: 1, 1>, scalar_prefetch = 0 : i64, scratch_operands = 0 : i64, tpu.core_type = #tpu.core_type<tc>, window_params = [{transform_indices = @transform_0, window_bounds = array<i64: 2, 8, 3>}, {transform_indices = @transform_1, window_bounds = array<i64: 2, 32, 3>}, {transform_indices = @transform_2, window_bounds = array<i64: 2, 8, 16>}, {transform_indices = @transform_3, window_bounds = array<i64: 2, 32, 16>}, {pipeline_mode = #tpu.pipeline_mode<synchronous>, transform_indices = @transform_4, window_bounds = array<i64: 3, 32>}, {pipeline_mode = #tpu.pipeline_mode<synchronous>, transform_indices = @transform_5, window_bounds = array<i64: 16, 32>}, {pipeline_mode = #tpu.pipeline_mode<synchronous>, transform_indices = @transform_6, window_bounds = array<i64: 1, 32>}, {pipeline_mode = #tpu.pipeline_mode<synchronous>, transform_indices = @transform_7, window_bounds = array<i64: 32, 32>}, {pipeline_mode = #tpu.pipeline_mode<synchronous>, transform_indices = @transform_8, window_bounds = array<i64: 1, 32>}, {pipeline_mode = #tpu.pipeline_mode<synchronous>, transform_indices = @transform_9, window_bounds = array<i64: 32, 32>}, {pipeline_mode = #tpu.pipeline_mode<synchronous>, transform_indices = @transform_10, window_bounds = array<i64: 16, 32>}, {pipeline_mode = #tpu.pipeline_mode<synchronous>, transform_indices = @transform_11, window_bounds = array<i64: 1, 32>}, {transform_indices = @transform_12, window_bounds = array<i64: 2, 8, 32>}]} {
    %c0 = arith.constant 0 : index
    %c0_0 = arith.constant 0 : index
    %c0_1 = arith.constant 0 : index
    %0 = vector.load %arg2[%c0, %c0_0, %c0_1] : memref<2x8x3xf32, #tpu.memory_space<vmem>>, vector<2x8x3xf32>
    %c0_2 = arith.constant 0 : index
    %c0_3 = arith.constant 0 : index
    %c0_4 = arith.constant 0 : index
    %1 = vector.load %arg3[%c0_2, %c0_3, %c0_4] : memref<2x32x3xf32, #tpu.memory_space<vmem>>, vector<2x32x3xf32>
    %c0_5 = arith.constant 0 : index
    %c0_6 = arith.constant 0 : index
    %c0_7 = arith.constant 0 : index
    %2 = vector.load %arg4[%c0_5, %c0_6, %c0_7] : memref<2x8x16xf32, #tpu.memory_space<vmem>>, vector<2x8x16xf32>
    %c0_8 = arith.constant 0 : index
    %c0_9 = arith.constant 0 : index
    %c0_10 = arith.constant 0 : index
    %3 = vector.load %arg5[%c0_8, %c0_9, %c0_10] : memref<2x32x16xf32, #tpu.memory_space<vmem>>, vector<2x32x16xf32>
    %cst = arith.constant 0.000000e+00 : f32
    %4 = vector.broadcast %cst : f32 to vector<2x8x32xf32>
    %5 = vector.extract_strided_slice %0 {offsets = [0, 0, 0], sizes = [2, 8, 1], strides = [1, 1, 1]} : vector<2x8x3xf32> to vector<2x8x1xf32>
    %6 = vector.shape_cast %5 : vector<2x8x1xf32> to vector<2x8xf32>
    %7 = vector.shape_cast %6 : vector<2x8xf32> to vector<2x8x1xf32>
    %8 = vector.extract_strided_slice %1 {offsets = [0, 0, 0], sizes = [2, 32, 1], strides = [1, 1, 1]} : vector<2x32x3xf32> to vector<2x32x1xf32>
    %9 = vector.shape_cast %8 : vector<2x32x1xf32> to vector<2x32xf32>
    %10 = vector.shape_cast %9 : vector<2x32xf32> to vector<2x1x32xf32>
    %11 = vector.broadcast %7 : vector<2x8x1xf32> to vector<2x8x32xf32>
    %12 = vector.broadcast %10 : vector<2x1x32xf32> to vector<2x8x32xf32>
    %13 = arith.subf %11, %12 : vector<2x8x32xf32>
    %14 = arith.mulf %13, %13 : vector<2x8x32xf32>
    %15 = arith.addf %4, %14 : vector<2x8x32xf32>
    %16 = vector.extract_strided_slice %0 {offsets = [0, 0, 1], sizes = [2, 8, 1], strides = [1, 1, 1]} : vector<2x8x3xf32> to vector<2x8x1xf32>
    %17 = vector.shape_cast %16 : vector<2x8x1xf32> to vector<2x8xf32>
    %18 = vector.shape_cast %17 : vector<2x8xf32> to vector<2x8x1xf32>
    %19 = vector.extract_strided_slice %1 {offsets = [0, 0, 1], sizes = [2, 32, 1], strides = [1, 1, 1]} : vector<2x32x3xf32> to vector<2x32x1xf32>
    %20 = vector.shape_cast %19 : vector<2x32x1xf32> to vector<2x32xf32>
    %21 = vector.shape_cast %20 : vector<2x32xf32> to vector<2x1x32xf32>
    %22 = vector.broadcast %18 : vector<2x8x1xf32> to vector<2x8x32xf32>
    %23 = vector.broadcast %21 : vector<2x1x32xf32> to vector<2x8x32xf32>
    %24 = arith.subf %22, %23 : vector<2x8x32xf32>
    %25 = arith.mulf %24, %24 : vector<2x8x32xf32>
    %26 = arith.addf %15, %25 : vector<2x8x32xf32>
    %27 = vector.extract_strided_slice %0 {offsets = [0, 0, 2], sizes = [2, 8, 1], strides = [1, 1, 1]} : vector<2x8x3xf32> to vector<2x8x1xf32>
    %28 = vector.shape_cast %27 : vector<2x8x1xf32> to vector<2x8xf32>
    %29 = vector.shape_cast %28 : vector<2x8xf32> to vector<2x8x1xf32>
    %30 = vector.extract_strided_slice %1 {offsets = [0, 0, 2], sizes = [2, 32, 1], strides = [1, 1, 1]} : vector<2x32x3xf32> to vector<2x32x1xf32>
    %31 = vector.shape_cast %30 : vector<2x32x1xf32> to vector<2x32xf32>
    %32 = vector.shape_cast %31 : vector<2x32xf32> to vector<2x1x32xf32>
    %33 = vector.broadcast %29 : vector<2x8x1xf32> to vector<2x8x32xf32>
    %34 = vector.broadcast %32 : vector<2x1x32xf32> to vector<2x8x32xf32>
    %35 = arith.subf %33, %34 : vector<2x8x32xf32>
    %36 = arith.mulf %35, %35 : vector<2x8x32xf32>
    %37 = arith.addf %26, %36 : vector<2x8x32xf32>
    %38 = tpu.iota {dimensions = array<i32: 2>} : vector<2x8x32xi32>
    %39 = tpu.bitcast %37 : vector<2x8x32xf32> -> vector<2x8x32xi32>
    %c-32_i32 = arith.constant -32 : i32
    %40 = vector.broadcast %c-32_i32 : i32 to vector<2x8x32xi32>
    %41 = arith.andi %39, %40 : vector<2x8x32xi32>
    %42 = arith.ori %41, %38 : vector<2x8x32xi32>
    %c0_11 = arith.constant 0 : index
    %c0_12 = arith.constant 0 : index
    %43 = vector.load %arg6[%c0_11, %c0_12] : memref<3x32xf32, #tpu.memory_space<vmem>>, vector<3x32xf32>
    %44 = vector.shape_cast %1 : vector<2x32x3xf32> to vector<64x3xf32>
    %cst_13 = arith.constant dense<0.000000e+00> : vector<64x32xf32>
    %45 = tpu.matmul %44, %43, %cst_13 {dimension_numbers = #tpu.dot_dimension_numbers<[1], [0], [0], [1], [0, 0, 1, 1], [], []>} : vector<64x3xf32>, vector<3x32xf32>, vector<64x32xf32> -> vector<64x32xf32>
    %46 = vector.shape_cast %3 : vector<2x32x16xf32> to vector<64x16xf32>
    %c0_14 = arith.constant 0 : index
    %c0_15 = arith.constant 0 : index
    %47 = vector.load %arg7[%c0_14, %c0_15] : memref<16x32xf32, #tpu.memory_space<vmem>>, vector<16x32xf32>
    %cst_16 = arith.constant dense<0.000000e+00> : vector<64x32xf32>
    %48 = tpu.matmul %46, %47, %cst_16 {dimension_numbers = #tpu.dot_dimension_numbers<[1], [0], [0], [1], [0, 0, 1, 1], [], []>} : vector<64x16xf32>, vector<16x32xf32>, vector<64x32xf32> -> vector<64x32xf32>
    %49 = arith.addf %45, %48 : vector<64x32xf32>
    %50 = vector.shape_cast %49 : vector<64x32xf32> to vector<2x32x32xf32>
    %c0_17 = arith.constant 0 : index
    %c0_18 = arith.constant 0 : index
    %51 = vector.load %arg8[%c0_17, %c0_18] : memref<1x32xf32, #tpu.memory_space<vmem>>, vector<1x32xf32>
    %52 = vector.shape_cast %0 : vector<2x8x3xf32> to vector<16x3xf32>
    %cst_19 = arith.constant dense<0.000000e+00> : vector<16x32xf32>
    %53 = tpu.matmul %52, %43, %cst_19 {dimension_numbers = #tpu.dot_dimension_numbers<[1], [0], [0], [1], [0, 0, 1, 1], [], []>} : vector<16x3xf32>, vector<3x32xf32>, vector<16x32xf32> -> vector<16x32xf32>
    %54 = vector.broadcast %51 : vector<1x32xf32> to vector<16x32xf32>
    %55 = arith.subf %54, %53 : vector<16x32xf32>
    %56 = vector.shape_cast %55 : vector<16x32xf32> to vector<2x8x32xf32>
    %cst_20 = arith.constant dense<2147483647> : vector<2x8xi32>
    %57 = vector.multi_reduction <minsi>, %42, %cst_20 [2] : vector<2x8x32xi32> to vector<2x8xi32>
    %58 = vector.shape_cast %57 : vector<2x8xi32> to vector<2x8x1xi32>
    %c31_i32 = arith.constant 31 : i32
    %59 = vector.broadcast %c31_i32 : i32 to vector<2x8x1xi32>
    %60 = arith.andi %58, %59 : vector<2x8x1xi32>
    %61 = vector.broadcast %60 : vector<2x8x1xi32> to vector<2x8x32xi32>
    %62 = arith.cmpi eq, %38, %61 : vector<2x8x32xi32>
    %c2147483647_i32 = arith.constant 2147483647 : i32
    %63 = vector.broadcast %c2147483647_i32 : i32 to vector<2x8x32xi32>
    %64 = arith.select %62, %63, %42 : vector<2x8x32xi1>, vector<2x8x32xi32>
    %65 = arith.extui %62 : vector<2x8x32xi1> to vector<2x8x32xi32>
    %66 = arith.sitofp %65 : vector<2x8x32xi32> to vector<2x8x32xf32>
    "tpu.trace_start"() <{level = 10 : i32, message = "bqn,bnd->bqd"}> : () -> ()
    %cst_21 = arith.constant dense<0.000000e+00> : vector<2x8x32xf32>
    %67 = tpu.matmul %66, %50, %cst_21 {dimension_numbers = #tpu.dot_dimension_numbers<[2], [1], [1], [2], [0, 0, 0, 1, 1, 2], [0], [0]>} : vector<2x8x32xf32>, vector<2x32x32xf32>, vector<2x8x32xf32> -> vector<2x8x32xf32>
    "tpu.trace_stop"() : () -> ()
    %68 = arith.addf %67, %56 : vector<2x8x32xf32>
    %cst_22 = arith.constant 0.000000e+00 : f32
    %69 = vector.broadcast %cst_22 : f32 to vector<2x8x32xf32>
    %70 = arith.maximumf %68, %69 : vector<2x8x32xf32>
    %71 = vector.shape_cast %70 : vector<2x8x32xf32> to vector<16x32xf32>
    %c0_23 = arith.constant 0 : index
    %c0_24 = arith.constant 0 : index
    %72 = vector.load %arg9[%c0_23, %c0_24] : memref<32x32xf32, #tpu.memory_space<vmem>>, vector<32x32xf32>
    %cst_25 = arith.constant dense<0.000000e+00> : vector<16x32xf32>
    %73 = tpu.matmul %71, %72, %cst_25 {dimension_numbers = #tpu.dot_dimension_numbers<[1], [0], [0], [1], [0, 0, 1, 1], [], []>} : vector<16x32xf32>, vector<32x32xf32>, vector<16x32xf32> -> vector<16x32xf32>
    %c0_26 = arith.constant 0 : index
    %c0_27 = arith.constant 0 : index
    %74 = vector.load %arg10[%c0_26, %c0_27] : memref<1x32xf32, #tpu.memory_space<vmem>>, vector<1x32xf32>
    %75 = vector.broadcast %74 : vector<1x32xf32> to vector<16x32xf32>
    %76 = arith.addf %73, %75 : vector<16x32xf32>
    %cst_28 = arith.constant 0.000000e+00 : f32
    %77 = vector.broadcast %cst_28 : f32 to vector<16x32xf32>
    %78 = arith.maximumf %76, %77 : vector<16x32xf32>
    %cst_29 = arith.constant dense<2147483647> : vector<2x8xi32>
    %79 = vector.multi_reduction <minsi>, %64, %cst_29 [2] : vector<2x8x32xi32> to vector<2x8xi32>
    %80 = vector.shape_cast %79 : vector<2x8xi32> to vector<2x8x1xi32>
    %c31_i32_30 = arith.constant 31 : i32
    %81 = vector.broadcast %c31_i32_30 : i32 to vector<2x8x1xi32>
    %82 = arith.andi %80, %81 : vector<2x8x1xi32>
    %83 = vector.broadcast %82 : vector<2x8x1xi32> to vector<2x8x32xi32>
    %84 = arith.cmpi eq, %38, %83 : vector<2x8x32xi32>
    %c2147483647_i32_31 = arith.constant 2147483647 : i32
    %85 = vector.broadcast %c2147483647_i32_31 : i32 to vector<2x8x32xi32>
    %86 = arith.select %84, %85, %64 : vector<2x8x32xi1>, vector<2x8x32xi32>
    %87 = arith.extui %84 : vector<2x8x32xi1> to vector<2x8x32xi32>
    %88 = arith.sitofp %87 : vector<2x8x32xi32> to vector<2x8x32xf32>
    "tpu.trace_start"() <{level = 10 : i32, message = "bqn,bnd->bqd"}> : () -> ()
    %cst_32 = arith.constant dense<0.000000e+00> : vector<2x8x32xf32>
    %89 = tpu.matmul %88, %50, %cst_32 {dimension_numbers = #tpu.dot_dimension_numbers<[2], [1], [1], [2], [0, 0, 0, 1, 1, 2], [0], [0]>} : vector<2x8x32xf32>, vector<2x32x32xf32>, vector<2x8x32xf32> -> vector<2x8x32xf32>
    "tpu.trace_stop"() : () -> ()
    %90 = arith.addf %89, %56 : vector<2x8x32xf32>
    %cst_33 = arith.constant 0.000000e+00 : f32
    %91 = vector.broadcast %cst_33 : f32 to vector<2x8x32xf32>
    %92 = arith.maximumf %90, %91 : vector<2x8x32xf32>
    %93 = vector.shape_cast %92 : vector<2x8x32xf32> to vector<16x32xf32>
    %c0_34 = arith.constant 0 : index
    %c0_35 = arith.constant 0 : index
    %94 = vector.load %arg9[%c0_34, %c0_35] : memref<32x32xf32, #tpu.memory_space<vmem>>, vector<32x32xf32>
    %cst_36 = arith.constant dense<0.000000e+00> : vector<16x32xf32>
    %95 = tpu.matmul %93, %94, %cst_36 {dimension_numbers = #tpu.dot_dimension_numbers<[1], [0], [0], [1], [0, 0, 1, 1], [], []>} : vector<16x32xf32>, vector<32x32xf32>, vector<16x32xf32> -> vector<16x32xf32>
    %c0_37 = arith.constant 0 : index
    %c0_38 = arith.constant 0 : index
    %96 = vector.load %arg10[%c0_37, %c0_38] : memref<1x32xf32, #tpu.memory_space<vmem>>, vector<1x32xf32>
    %97 = vector.broadcast %96 : vector<1x32xf32> to vector<16x32xf32>
    %98 = arith.addf %95, %97 : vector<16x32xf32>
    %cst_39 = arith.constant 0.000000e+00 : f32
    %99 = vector.broadcast %cst_39 : f32 to vector<16x32xf32>
    %100 = arith.maximumf %98, %99 : vector<16x32xf32>
    %101 = arith.maximumf %78, %100 : vector<16x32xf32>
    %cst_40 = arith.constant dense<2147483647> : vector<2x8xi32>
    %102 = vector.multi_reduction <minsi>, %86, %cst_40 [2] : vector<2x8x32xi32> to vector<2x8xi32>
    %103 = vector.shape_cast %102 : vector<2x8xi32> to vector<2x8x1xi32>
    %c31_i32_41 = arith.constant 31 : i32
    %104 = vector.broadcast %c31_i32_41 : i32 to vector<2x8x1xi32>
    %105 = arith.andi %103, %104 : vector<2x8x1xi32>
    %106 = vector.broadcast %105 : vector<2x8x1xi32> to vector<2x8x32xi32>
    %107 = arith.cmpi eq, %38, %106 : vector<2x8x32xi32>
    %c2147483647_i32_42 = arith.constant 2147483647 : i32
    %108 = vector.broadcast %c2147483647_i32_42 : i32 to vector<2x8x32xi32>
    %109 = arith.select %107, %108, %86 : vector<2x8x32xi1>, vector<2x8x32xi32>
    %110 = arith.extui %107 : vector<2x8x32xi1> to vector<2x8x32xi32>
    %111 = arith.sitofp %110 : vector<2x8x32xi32> to vector<2x8x32xf32>
    "tpu.trace_start"() <{level = 10 : i32, message = "bqn,bnd->bqd"}> : () -> ()
    %cst_43 = arith.constant dense<0.000000e+00> : vector<2x8x32xf32>
    %112 = tpu.matmul %111, %50, %cst_43 {dimension_numbers = #tpu.dot_dimension_numbers<[2], [1], [1], [2], [0, 0, 0, 1, 1, 2], [0], [0]>} : vector<2x8x32xf32>, vector<2x32x32xf32>, vector<2x8x32xf32> -> vector<2x8x32xf32>
    "tpu.trace_stop"() : () -> ()
    %113 = arith.addf %112, %56 : vector<2x8x32xf32>
    %cst_44 = arith.constant 0.000000e+00 : f32
    %114 = vector.broadcast %cst_44 : f32 to vector<2x8x32xf32>
    %115 = arith.maximumf %113, %114 : vector<2x8x32xf32>
    %116 = vector.shape_cast %115 : vector<2x8x32xf32> to vector<16x32xf32>
    %c0_45 = arith.constant 0 : index
    %c0_46 = arith.constant 0 : index
    %117 = vector.load %arg9[%c0_45, %c0_46] : memref<32x32xf32, #tpu.memory_space<vmem>>, vector<32x32xf32>
    %cst_47 = arith.constant dense<0.000000e+00> : vector<16x32xf32>
    %118 = tpu.matmul %116, %117, %cst_47 {dimension_numbers = #tpu.dot_dimension_numbers<[1], [0], [0], [1], [0, 0, 1, 1], [], []>} : vector<16x32xf32>, vector<32x32xf32>, vector<16x32xf32> -> vector<16x32xf32>
    %c0_48 = arith.constant 0 : index
    %c0_49 = arith.constant 0 : index
    %119 = vector.load %arg10[%c0_48, %c0_49] : memref<1x32xf32, #tpu.memory_space<vmem>>, vector<1x32xf32>
    %120 = vector.broadcast %119 : vector<1x32xf32> to vector<16x32xf32>
    %121 = arith.addf %118, %120 : vector<16x32xf32>
    %cst_50 = arith.constant 0.000000e+00 : f32
    %122 = vector.broadcast %cst_50 : f32 to vector<16x32xf32>
    %123 = arith.maximumf %121, %122 : vector<16x32xf32>
    %124 = arith.maximumf %101, %123 : vector<16x32xf32>
    %cst_51 = arith.constant dense<2147483647> : vector<2x8xi32>
    %125 = vector.multi_reduction <minsi>, %109, %cst_51 [2] : vector<2x8x32xi32> to vector<2x8xi32>
    %126 = vector.shape_cast %125 : vector<2x8xi32> to vector<2x8x1xi32>
    %c31_i32_52 = arith.constant 31 : i32
    %127 = vector.broadcast %c31_i32_52 : i32 to vector<2x8x1xi32>
    %128 = arith.andi %126, %127 : vector<2x8x1xi32>
    %129 = vector.broadcast %128 : vector<2x8x1xi32> to vector<2x8x32xi32>
    %130 = arith.cmpi eq, %38, %129 : vector<2x8x32xi32>
    %131 = arith.extui %130 : vector<2x8x32xi1> to vector<2x8x32xi32>
    %132 = arith.sitofp %131 : vector<2x8x32xi32> to vector<2x8x32xf32>
    "tpu.trace_start"() <{level = 10 : i32, message = "bqn,bnd->bqd"}> : () -> ()
    %cst_53 = arith.constant dense<0.000000e+00> : vector<2x8x32xf32>
    %133 = tpu.matmul %132, %50, %cst_53 {dimension_numbers = #tpu.dot_dimension_numbers<[2], [1], [1], [2], [0, 0, 0, 1, 1, 2], [0], [0]>} : vector<2x8x32xf32>, vector<2x32x32xf32>, vector<2x8x32xf32> -> vector<2x8x32xf32>
    "tpu.trace_stop"() : () -> ()
    %134 = arith.addf %133, %56 : vector<2x8x32xf32>
    %cst_54 = arith.constant 0.000000e+00 : f32
    %135 = vector.broadcast %cst_54 : f32 to vector<2x8x32xf32>
    %136 = arith.maximumf %134, %135 : vector<2x8x32xf32>
    %137 = vector.shape_cast %136 : vector<2x8x32xf32> to vector<16x32xf32>
    %c0_55 = arith.constant 0 : index
    %c0_56 = arith.constant 0 : index
    %138 = vector.load %arg9[%c0_55, %c0_56] : memref<32x32xf32, #tpu.memory_space<vmem>>, vector<32x32xf32>
    %cst_57 = arith.constant dense<0.000000e+00> : vector<16x32xf32>
    %139 = tpu.matmul %137, %138, %cst_57 {dimension_numbers = #tpu.dot_dimension_numbers<[1], [0], [0], [1], [0, 0, 1, 1], [], []>} : vector<16x32xf32>, vector<32x32xf32>, vector<16x32xf32> -> vector<16x32xf32>
    %c0_58 = arith.constant 0 : index
    %c0_59 = arith.constant 0 : index
    %140 = vector.load %arg10[%c0_58, %c0_59] : memref<1x32xf32, #tpu.memory_space<vmem>>, vector<1x32xf32>
    %141 = vector.broadcast %140 : vector<1x32xf32> to vector<16x32xf32>
    %142 = arith.addf %139, %141 : vector<16x32xf32>
    %cst_60 = arith.constant 0.000000e+00 : f32
    %143 = vector.broadcast %cst_60 : f32 to vector<16x32xf32>
    %144 = arith.maximumf %142, %143 : vector<16x32xf32>
    %145 = arith.maximumf %124, %144 : vector<16x32xf32>
    %c0_61 = arith.constant 0 : index
    %c0_62 = arith.constant 0 : index
    %146 = vector.load %arg11[%c0_61, %c0_62] : memref<32x32xf32, #tpu.memory_space<vmem>>, vector<32x32xf32>
    %cst_63 = arith.constant dense<0.000000e+00> : vector<16x32xf32>
    %147 = tpu.matmul %145, %146, %cst_63 {dimension_numbers = #tpu.dot_dimension_numbers<[1], [0], [0], [1], [0, 0, 1, 1], [], []>} : vector<16x32xf32>, vector<32x32xf32>, vector<16x32xf32> -> vector<16x32xf32>
    %148 = vector.shape_cast %2 : vector<2x8x16xf32> to vector<16x16xf32>
    %c0_64 = arith.constant 0 : index
    %c0_65 = arith.constant 0 : index
    %149 = vector.load %arg12[%c0_64, %c0_65] : memref<16x32xf32, #tpu.memory_space<vmem>>, vector<16x32xf32>
    %cst_66 = arith.constant dense<0.000000e+00> : vector<16x32xf32>
    %150 = tpu.matmul %148, %149, %cst_66 {dimension_numbers = #tpu.dot_dimension_numbers<[1], [0], [0], [1], [0, 0, 1, 1], [], []>} : vector<16x16xf32>, vector<16x32xf32>, vector<16x32xf32> -> vector<16x32xf32>
    %151 = arith.addf %147, %150 : vector<16x32xf32>
    %c0_67 = arith.constant 0 : index
    %c0_68 = arith.constant 0 : index
    %152 = vector.load %arg13[%c0_67, %c0_68] : memref<1x32xf32, #tpu.memory_space<vmem>>, vector<1x32xf32>
    %153 = vector.broadcast %152 : vector<1x32xf32> to vector<16x32xf32>
    %154 = arith.addf %151, %153 : vector<16x32xf32>
    %cst_69 = arith.constant 0.000000e+00 : f32
    %155 = vector.broadcast %cst_69 : f32 to vector<16x32xf32>
    %156 = arith.maximumf %154, %155 : vector<16x32xf32>
    %157 = vector.shape_cast %156 : vector<16x32xf32> to vector<2x8x32xf32>
    %c0_70 = arith.constant 0 : index
    %c0_71 = arith.constant 0 : index
    %c0_72 = arith.constant 0 : index
    %158 = vector.load %arg14[%c0_70, %c0_71, %c0_72] : memref<2x8x32xf32, #tpu.memory_space<vmem>>, vector<2x8x32xf32>
    tpu.vector_store %arg14[%c0_70, %c0_71, %c0_72], %157 {strides = array<i32>} : memref<2x8x32xf32, #tpu.memory_space<vmem>>, vector<2x8x32xf32>,
    return
  }
  func.func @transform_0(%arg0: i32, %arg1: i32) -> (i32, i32, i32) {
    %c0_i32 = arith.constant 0 : i32
    %c0_i32_0 = arith.constant 0 : i32
    return %arg0, %arg1, %c0_i32 : i32, i32, i32
  }
  func.func @transform_1(%arg0: i32, %arg1: i32) -> (i32, i32, i32) {
    %c0_i32 = arith.constant 0 : i32
    %c0_i32_0 = arith.constant 0 : i32
    %c0_i32_1 = arith.constant 0 : i32
    return %arg0, %c0_i32, %c0_i32_0 : i32, i32, i32
  }
  func.func @transform_2(%arg0: i32, %arg1: i32) -> (i32, i32, i32) {
    %c0_i32 = arith.constant 0 : i32
    %c0_i32_0 = arith.constant 0 : i32
    return %arg0, %arg1, %c0_i32 : i32, i32, i32
  }
  func.func @transform_3(%arg0: i32, %arg1: i32) -> (i32, i32, i32) {
    %c0_i32 = arith.constant 0 : i32
    %c0_i32_0 = arith.constant 0 : i32
    %c0_i32_1 = arith.constant 0 : i32
    return %arg0, %c0_i32, %c0_i32_0 : i32, i32, i32
  }
  func.func @transform_4(%arg0: i32, %arg1: i32) -> (i32, i32) {
    %c0_i32 = arith.constant 0 : i32
    %c0_i32_0 = arith.constant 0 : i32
    %c0_i32_1 = arith.constant 0 : i32
    return %c0_i32, %c0_i32_0 : i32, i32
  }
  func.func @transform_5(%arg0: i32, %arg1: i32) -> (i32, i32) {
    %c0_i32 = arith.constant 0 : i32
    %c0_i32_0 = arith.constant 0 : i32
    %c0_i32_1 = arith.constant 0 : i32
    return %c0_i32, %c0_i32_0 : i32, i32
  }
  func.func @transform_6(%arg0: i32, %arg1: i32) -> (i32, i32) {
    %c0_i32 = arith.constant 0 : i32
    %c0_i32_0 = arith.constant 0 : i32
    %c0_i32_1 = arith.constant 0 : i32
    return %c0_i32, %c0_i32_0 : i32, i32
  }
  func.func @transform_7(%arg0: i32, %arg1: i32) -> (i32, i32) {
    %c0_i32 = arith.constant 0 : i32
    %c0_i32_0 = arith.constant 0 : i32
    %c0_i32_1 = arith.constant 0 : i32
    return %c0_i32, %c0_i32_0 : i32, i32
  }
  func.func @transform_8(%arg0: i32, %arg1: i32) -> (i32, i32) {
    %c0_i32 = arith.constant 0 : i32
    %c0_i32_0 = arith.constant 0 : i32
    %c0_i32_1 = arith.constant 0 : i32
    return %c0_i32, %c0_i32_0 : i32, i32
  }
  func.func @transform_9(%arg0: i32, %arg1: i32) -> (i32, i32) {
    %c0_i32 = arith.constant 0 : i32
    %c0_i32_0 = arith.constant 0 : i32
    %c0_i32_1 = arith.constant 0 : i32
    return %c0_i32, %c0_i32_0 : i32, i32
  }
  func.func @transform_10(%arg0: i32, %arg1: i32) -> (i32, i32) {
    %c0_i32 = arith.constant 0 : i32
    %c0_i32_0 = arith.constant 0 : i32
    %c0_i32_1 = arith.constant 0 : i32
    return %c0_i32, %c0_i32_0 : i32, i32
  }
  func.func @transform_11(%arg0: i32, %arg1: i32) -> (i32, i32) {
    %c0_i32 = arith.constant 0 : i32
    %c0_i32_0 = arith.constant 0 : i32
    %c0_i32_1 = arith.constant 0 : i32
    return %c0_i32, %c0_i32_0 : i32, i32
  }
  func.func @transform_12(%arg0: i32, %arg1: i32) -> (i32, i32, i32) {
    %c0_i32 = arith.constant 0 : i32
    %c0_i32_0 = arith.constant 0 : i32
    return %arg0, %arg1, %c0_i32 : i32, i32, i32
  }
}

</mosaic_0001>

<bundles_post_ra>
// kernel: tpu_custom_call.1
= control target key start
LH: loop header
LB: loop body
LE: loop exit
PB: predicated region body
PF: predicated region fallthrough
CT: control target
= control target key end

     0   :  { %v2527_v1 = vmov 1   ;;  %v2528_v2 = vmov 0   ;;  %s3001_s0 = inlined_call_operand.vmem [shape: f32[2,8,3], index: 0, kind: input, shape index: {}]   ;;  %s3002_s1 = inlined_call_operand.vmem [shape: f32[2,32,3], index: 1, kind: input, shape index: {}]   ;;  %s3003_s2 = inlined_call_operand.vmem [shape: f32[2,8,16], index: 2, kind: input, shape index: {}]   ;;  %s3004_s3 = inlined_call_operand.vmem [shape: f32[2,32,16], index: 3, kind: input, shape index: {}]   ;;  %s3005_s4 = inlined_call_operand.vmem [shape: f32[3,32], index: 4, kind: input, shape index: {}]   ;;  %s3006_s5 = inlined_call_operand.vmem [shape: f32[16,32], index: 5, kind: input, shape index: {}]   ;;  %s3007_s6 = inlined_call_operand.vmem [shape: f32[1,32], index: 6, kind: input, shape index: {}]   ;;  %s3008_s7 = inlined_call_operand.vmem [shape: f32[32,32], index: 7, kind: input, shape index: {}]   ;;  %s3009_s8 = inlined_call_operand.vmem [shape: f32[1,32], index: 8, kind: input, shape index: {}]   ;;  %s3010_s9 = inlined_call_operand.vmem [shape: f32[32,32], index: 9, kind: input, shape index: {}]   ;;  %s3011_s10 = inlined_call_operand.vmem [shape: f32[16,32], index: 10, kind: input, shape index: {}]   ;;  %s3012_s11 = inlined_call_operand.vmem [shape: f32[1,32], index: 11, kind: input, shape index: {}]   ;;  %s3013_s12 = inlined_call_operand.hbm [shape: f32[2,8,32], index: 12, kind: output, shape index: {}]  }
   0x1   :  { %v2604_v0 = vld [vmem:[%s3002_s1] sm:$0xff]  ;;  %2490 = vset.pattern.permute.xlu1 %v2527_v1  ;;  %2489 = vset.pattern.permute.xlu0 %v2528_v2  ;;  %v2611_v3 = vld [vmem:[%s3002_s1 + $0x8] sm:$0xff] }
   0x2   :  { %185 = vperm.xlu1 %2490, %v2604_v0   ;;  %81 = vperm.xlu0 %2489, %v2604_v0  }
   0x3   :  { %17 = vsyncpa [#allocation3], 0  ;;  %v2618_v4 = vld [vmem:[%s3002_s1 + $0x10] sm:$0xff]  ;;  %v2625_v5 = vld [vmem:[%s3002_s1 + $0x18] sm:$0xff]  ;;  %v2529_v7 = vmov 2   ;;  %vm365_vm0 = vcmask 130048   ;;  %v104_v27 = vlaneseq }
   0x4   :  { %v42_v6 = vld [vmem:[%s3001_s0] sm:$0xff]  ;;  %v49_v9 = vld [vmem:[%s3002_s1 + $0x28] sm:$0xff]  ;;  %v51_v10 = vld [vmem:[%s3002_s1 + $0x38] sm:$0xff]  ;;  %vm495_vm1 = vcmask 23552   ;;  %vm512_vm2 = vcmask 1042432   ;;  %vm115_vm3 = vcmask 130112  }
   0x5   :  { %v2636_v8 = vld [vmem:[%s3002_s1 + $0x20] sm:$0xff]  ;;  %v50_v11 = vld [vmem:[%s3002_s1 + $0x30] sm:$0xff]  ;;  %v43_v12 = vld [vmem:[%s3001_s0 + $0x8] sm:$0xff]  ;;  %2221 = vmatprep.mubr.msk.f32.mxu1 %vm495_vm1, %v42_v6  ;;  %v2712_v30 = vand.u32 127, %v104_v27  ;;  %v107_v33 = vshrl.u32 %v104_v27, 7  ;;  %vm122_vm4 = vcmask 195712  }
   0x6   :  { %188 = vperm.xlu1 %2490, %v2611_v3   ;;  %84 = vperm.xlu0 %2489, %v2611_v3   ;;  %v363_v13 = vld [vmem:[%s3006_s5] sm:$0xff]  ;;  %v364_v14 = vld [vmem:[%s3006_s5 + $0x8] sm:$0xff]  ;;  %v56_v19 = vld [vmem:[%s3004_s3 + $0x10] sm:$0xff]  ;;  %vm129_vm5 = vcmask 261312   ;;  %vm709_vm6 = vcmask 261120   ;;  %vm2531_vm8 = vmmov 0  }
   0x7   :  { %v54_v15 = vld [vmem:[%s3004_s3] sm:$0xff]  ;;  %v2374_v16 = vpack.c.bf16 %v364_v14, %v363_v13  ;;  %v55_v18 = vld [vmem:[%s3004_s3 + $0x8] sm:$0xff]  ;;  %v57_v20 = vld [vmem:[%s3004_s3 + $0x18] sm:$0xff]  ;;  %v110_v34 = vadd.s32 4294967288, %v2712_v30  ;;  %v117_v37 = vadd.s32 4294967280, %v2712_v30  ;;  %v2717_v38 = vsub.s32 %v2712_v30, %v107_v33  ;;  %s2533_s1 = smov [#allocation2]  }
   0x8   :  { %2193 = vmatprep.mubr.msk.f32.mxu0 %vm365_vm0, %v54_v15  ;;  %v362_v17 = vld [vmem:[%s3005_s4] sm:$0x7]  ;;  %v59_v22 = vld [vmem:[%s3004_s3 + $0x28] sm:$0xff]  ;;  %v60_v23 = vld [vmem:[%s3004_s3 + $0x30] sm:$0xff]  ;;  %v124_v42 = vadd.s32 4294967272, %v2712_v30  ;;  %s2028_s23 = sshll.u32 %s2533_s1, 4  ;;  %s2029_s23 = int_to_ptr.vmem [resolvable:$true] %s2028_s23 }
   0x9   :  { %2375 = vmatprep.subr.bf16.mxu0 %v2374_v16  ;;  %2219 = vmatprep.subr.msk.mxu1 %vm512_vm2, %v362_v17  ;;  %v58_v21 = vld [vmem:[%s3004_s3 + $0x20] sm:$0xff]  ;;  %v61_v24 = vld [vmem:[%s3004_s3 + $0x38] sm:$0xff]  ;;  %v2719_v39 = vsub.s32 %v110_v34, %v107_v33  ;;  %v2724_v43 = vsub.s32 %v117_v37, %v107_v33  ;;  %s2503_s24 = scalar_lea.vmem %s2029_s23, 256  ;;  %p2508_p1 = scmp.lt.s32.totalorder %s2029_s23, %s2029_s23 }
   0xa   :  { %191 = vperm.xlu1 %2490, %v2618_v4   ;;  %87 = vperm.xlu0 %2489, %v2618_v4   ;;  %v2728_v48 = vsub.s32 %v124_v42, %v107_v33  ;;  %p2504_p0 = scmp.ne.s32.totalorder %s2029_s23, %s2503_s24  ;;  %p2509_p2 = scmp.lt.s32.totalorder %s2503_s24, %s2503_s24 }
   0xb   :  { %2377 = vmatpush3.bf16.msra.mxu0 %v2374_v16  ;;  %2220 = vmatpush3.msk.msra.mxu1 %vm512_vm2, %v362_v17 }
   0xc   :  { %2205 = vmatprep.subr.msk.mxu0 %vm512_vm2, %v362_v17  ;;  %2222 = vmatmul.mubr.msk.f32.vlgmr.msra.gmra.mrb[0].mxu1 %vm495_vm1, %v43_v12  ;;  %p2510_p3 = por %p2509_p2, %p2508_p1 }
   0xe   :  { %194 = vperm.xlu1 %2490, %v2625_v5   ;;  %90 = vperm.xlu0 %2489, %v2625_v5   ;;  %p2511_p4 = pnand %p2510_p3, %p2504_p0 }
   0xf   :  { %2194 = vmatmul.mubr.msk.f32.vlgmr.msra.gmra.mrb[0].mxu0 %vm365_vm0, %v55_v18 }
  0x10   :  { %2196 = vmatprep.mubr.msk.f32.mxu0 %vm365_vm0, %v56_v19  ;;  %2206 = vmatpush3.msk.msra.mxu0 %vm512_vm2, %v362_v17 }
  0x12   :  { %2491 = vset.pattern.permute.xlu1 %v2529_v7  ;;  %2493 = vset.pattern.permute.xlu0 %v2527_v1 }
  0x13   :  { %278 = vperm.xlu1 %2491, %v2611_v3   ;;  %177 = vperm.xlu0 %2493, %v42_v6  }
  0x14   :  { %2197 = vmatmul.mubr.msk.f32.gmra.mrb[2].mxu0 %vm365_vm0, %v57_v20 }
  0x15   :  { %2199 = vmatprep.mubr.msk.f32.mxu0 %vm365_vm0, %v58_v21 }
  0x17   :  { %281 = vperm.xlu1 %2491, %v2618_v4   ;;  %197 = vperm.xlu0 %2493, %v2636_v8  }
  0x18   :  { %2200 = vmatmul.mubr.msk.f32.gmra.mrb[4].mxu0 %vm365_vm0, %v59_v22 }
  0x19   :  { %2202 = vmatprep.mubr.msk.f32.mxu0 %vm365_vm0, %v60_v23 }
  0x1b   :  { %2492 = vset.pattern.permute.xlu1 %v2528_v2  ;;  %2494 = vset.pattern.permute.xlu0 %v2529_v7 }
  0x1c   :  { %275 = vperm.xlu0 %2494, %v2604_v0   ;;  %64 = vperm.xlu1 %2492, %v42_v6  }
  0x1d   :  { %2203 = vmatmul.mubr.msk.f32.gmra.mrb[6].mxu0 %vm365_vm0, %v61_v24 }
  0x1e   :  { %2207 = vmatprep.mubr.msk.f32.mxu0 %vm495_vm1, %v2604_v0 }
  0x20   :  { %284 = vperm.xlu0 %2494, %v2625_v5   ;;  %93 = vperm.xlu1 %2492, %v2636_v8  }
  0x21   :  { %2208 = vmatmul.mubr.msk.f32.vlgmr.msra.gmra.mrb[0].mxu0 %vm495_vm1, %v2611_v3 }
  0x22   :  { %2210 = vmatprep.mubr.msk.f32.mxu0 %vm495_vm1, %v2618_v4 }
  0x24   :  { %267 = vperm.xlu0 %2494, %v42_v6   ;;  %96 = vperm.xlu1 %2492, %v49_v9  }
  0x25   :  { %2211 = vmatmul.mubr.msk.f32.gmra.mrb[2].mxu0 %vm495_vm1, %v2625_v5 }
  0x26   :  { %2213 = vmatprep.mubr.msk.f32.mxu0 %vm495_vm1, %v2636_v8 }
  0x28   :  { %2495 = vset.pattern.permute.xlu1 %v2527_v1  ;;  %290 = vperm.xlu0 %2494, %v49_v9  }
  0x29   :  { %200 = vperm.xlu1 %2495, %v49_v9   ;;  %2214 = vmatmul.mubr.msk.f32.gmra.mrb[4].mxu0 %vm495_vm1, %v49_v9 }
  0x2a   :  { %2216 = vmatprep.mubr.msk.f32.mxu0 %vm495_vm1, %v50_v11 }
  0x2c   :  { %2499 = vset.pattern.permute.xlu0 %v2528_v2 }
  0x2d   :  { %2496 = vset.pattern.permute.xlu1 %v2528_v2  ;;  %102 = vperm.xlu0 %2499, %v51_v10  }
  0x2e   :  { %99 = vperm.xlu1 %2496, %v50_v11   ;;  %2217 = vmatmul.mubr.msk.f32.gmra.mrb[6].mxu0 %vm495_vm1, %v51_v10 }
  0x31   :  { %69 = vperm.xlu0 %2499, %v43_v12  }
  0x32   :  { %2497 = vset.pattern.permute.xlu1 %v2527_v1 }
  0x33   :  { %203 = vperm.xlu1 %2497, %v50_v11  }
  0x35   :  { %2502 = vset.pattern.permute.xlu0 %v2529_v7 }
  0x37   :  { %206 = vperm.xlu1 %2497, %v51_v10  }
  0x3b   :  { %2498 = vset.pattern.permute.xlu1 %v2529_v7 }
  0x3c   :  { %287 = vperm.xlu1 %2498, %v2636_v8  }
  0x40   :  { %293 = vperm.xlu1 %2498, %v50_v11  }
  0x44   :  { %296 = vperm.xlu1 %2498, %v51_v10  }
  0x48   :  { %2500 = vset.pattern.permute.xlu1 %v2527_v1 }
  0x49   :  { %181 = vperm.xlu1 %2500, %v43_v12  }
  0x4d   :  { %2501 = vset.pattern.permute.xlu1 %v2529_v7 }
  0x4e   :  { %271 = vperm.xlu1 %2501, %v43_v12  }
  0x81   :  { %v186_v25 = vpop.permute.xlu1 %185  ;;  %v82_v26 = vpop.permute.xlu0 %81 }
  0x82   :  { %v109_v40 = vrot.slane %v82_v26, %v2717_v38  ;;  %v211_v55 = vrot.slane %v186_v25, %v2717_v38 }
  0x85   :  { %v189_v28 = vpop.permute.xlu1 %188  ;;  %v85_v29 = vpop.permute.xlu0 %84 }
  0x86   :  { %v114_v41 = vrot.slane %v85_v29, %v2719_v39  ;;  %v215_v53 = vrot.slane %v189_v28, %v2719_v39 }
  0x88   :  { %v116_v47 = vsel %vm115_vm3, %v114_v41, %v109_v40  ;;  %v216_v62 = vsel %vm115_vm3, %v215_v53, %v211_v55 }
  0x89   :  { %v192_v31 = vpop.permute.xlu1 %191  ;;  %v88_v32 = vpop.permute.xlu0 %87 }
  0x8a   :  { %v121_v46 = vrot.slane %v88_v32, %v2724_v43  ;;  %v220_v54 = vrot.slane %v192_v31, %v2724_v43 }
  0x8c   :  { %v123_v52 = vsel %vm122_vm4, %v121_v46, %v116_v47  ;;  %v221_v63 = vsel %vm122_vm4, %v220_v54, %v216_v62 }
  0x8d   :  { %v195_v35 = vpop.permute.xlu1 %194  ;;  %v91_v36 = vpop.permute.xlu0 %90 }
  0x8e   :  { %v128_v51 = vrot.slane %v91_v36, %v2728_v48  ;;  %v225_v56 = vrot.slane %v195_v35, %v2728_v48 }
  0x90   :  { %v130_v58 = vsel %vm129_vm5, %v128_v51, %v123_v52  ;;  %v226_v2 = vsel %vm129_vm5, %v225_v56, %v221_v63 }
  0x92   :  { %v279_v44 = vpop.permute.xlu1 %278  ;;  %v178_v45 = vpop.permute.xlu0 %177 }
  0x93   :  { %v305_v60 = vrot.slane %v279_v44, %v2719_v39  ;;  %v260_v6 = vsub.f32 %v178_v45, %v226_v2 }
  0x95   :  { %v262_v13 = vmul.f32 %v260_v6, %v260_v6 }
  0x96   :  { %v282_v49 = vpop.permute.xlu1 %281  ;;  %v198_v50 = vpop.permute.xlu0 %197 }
  0x97   :  { %v310_v3 = vrot.slane %v282_v49, %v2724_v43  ;;  %v230_v35 = vrot.slane %v198_v50, %v2717_v38 }
  0x9b   :  { %v276_v57 = vpop.permute.xlu0 %275  ;;  %v65_v59 = vpop.permute.xlu1 %64 }
  0x9c   :  { %v301_v61 = vrot.slane %v276_v57, %v2717_v38  ;;  %v170_v1 = vsub.f32 %v65_v59, %v130_v58 }
  0x9e   :  { %v306_v0 = vsel %vm115_vm3, %v305_v60, %v301_v61  ;;  %v172_v9 = vmul.f32 %v170_v1, %v170_v1 }
  0x9f   :  { %v285_v4 = vpop.permute.xlu0 %284  ;;  %v94_v5 = vpop.permute.xlu1 %93  ;;  %v311_v8 = vsel %vm122_vm4, %v310_v3, %v306_v0 }
  0xa0   :  { %v315_v7 = vrot.slane %v285_v4, %v2728_v48  ;;  %v264_v15 = vadd.f32 %v262_v13, %v172_v9  ;;  %v134_v34 = vrot.slane %v94_v5, %v2717_v38  ;;  %v2530_v13 = vmov 0.0|0.0  }
  0xa1   :  { %2378 = vmatprep.subr.bf16.mxu1 %v2530_v13  ;;  %2404 = vmatprep.subr.bf16.mxu0 %v2530_v13 }
  0xa2   :  { %v316_v10 = vsel %vm129_vm5, %v315_v7, %v311_v8 }
  0xa3   :  { %v268_v11 = vpop.permute.xlu0 %267  ;;  %v97_v12 = vpop.permute.xlu1 %96 }
  0xa4   :  { %v350_v14 = vsub.f32 %v268_v11, %v316_v10  ;;  %v138_v29 = vrot.slane %v97_v12, %v2719_v39 }
  0xa6   :  { %v352_v16 = vmul.f32 %v350_v14, %v350_v14  ;;  %v139_v37 = vsel %vm115_vm3, %v138_v29, %v134_v34 }
  0xa7   :  { %v291_v27 = vpop.permute.xlu0 %290 }
  0xa8   :  { %v354_v17 = vadd.f32 %v352_v16, %v264_v15  ;;  %v201_v18 = vpop.permute.xlu1 %200  ;;  %v324_v55 = vrot.slane %v291_v27, %v2719_v39 }
  0xa9   :  { %v234_v36 = vrot.slane %v201_v18, %v2719_v39 }
  0xaa   :  { %v358_v19 = vand.u32 4294967264, %v354_v17  ;;  %v2532_v17 = vmov 0.0  }
  0xab   :  { %v235_v46 = vsel %vm115_vm3, %v234_v36, %v230_v35  ;;  %2232 = vmatprep.mubr.msk.f32.mxu1 %vm2531_vm8, %v2532_v17  ;;  %2276 = vmatprep.mubr.msk.f32.mxu0 %vm2531_vm8, %v2532_v17 }
  0xac   :  { %v2748_v20 = vor.u32 %v358_v19, %v2712_v30  ;;  %v103_v32 = vpop.permute.xlu0 %102 }
  0xad   :  { %v100_v21 = vpop.permute.xlu1 %99  ;;  %v148_v40 = vrot.slane %v103_v32, %v2728_v48 }
  0xae   :  { %v710_v22 = vsel %vm709_vm6, %v2748_v20, 2147483647  ;;  %v143_v33 = vrot.slane %v100_v21, %v2724_v43 }
  0xaf   :  { %v712_v23 = vshra.s32 %v710_v22, 16  ;;  %v711_v6 = vand.u32 65535, %v710_v22 }
  0xb0   :  { %v144_v44 = vsel %vm122_vm4, %v143_v33, %v139_v37  ;;  %v70_v47 = vpop.permute.xlu0 %69 }
  0xb1   :  { %v714_v24 = vcvt.s32.f32 %v712_v23  ;;  %v149_v49 = vsel %vm129_vm5, %v148_v40, %v144_v44  ;;  %v713_v8 = vcvt.s32.f32 %v711_v6 }
  0xb2   :  { %v204_v25 = vpop.permute.xlu1 %203  ;;  %v171_v58 = vsub.f32 %v70_v47, %v149_v49 }
  0xb3   :  { %715 = vmin.xlane.f32.xlu0 %v714_v24  ;;  %v239_v41 = vrot.slane %v204_v25, %v2724_v43 }
  0xb4   :  { %v173_v63 = vmul.f32 %v171_v58, %v171_v58  ;;  %v899_v58 = vld [vmem:[%s3008_s7 + $0x8] sm:$0xff] }
  0xb5   :  { %v240_v51 = vsel %vm122_vm4, %v239_v41, %v235_v46 }
  0xb6   :  { %v207_v26 = vpop.permute.xlu1 %206 }
  0xb7   :  { %v244_v45 = vrot.slane %v207_v26, %v2728_v48 }
  0xb9   :  { %v245_v53 = vsel %vm129_vm5, %v244_v45, %v240_v51 }
  0xbb   :  { %v288_v28 = vpop.permute.xlu1 %287 }
  0xbc   :  { %v320_v50 = vrot.slane %v288_v28, %v2717_v38 }
  0xbe   :  { %v325_v59 = vsel %vm115_vm3, %v324_v55, %v320_v50 }
  0xbf   :  { %v294_v31 = vpop.permute.xlu1 %293 }
  0xc0   :  { %v329_v52 = vrot.slane %v294_v31, %v2724_v43 }
  0xc2   :  { %v330_v61 = vsel %vm122_vm4, %v329_v52, %v325_v59 }
  0xc3   :  { %v297_v42 = vpop.permute.xlu1 %296 }
  0xc4   :  { %v334_v56 = vrot.slane %v297_v42, %v2728_v48 }
  0xc6   :  { %v335_v38 = vsel %vm129_vm5, %v334_v56, %v330_v61  ;;  %v901_v61 = vld [vmem:[%s3008_s7 + $0x18] sm:$0xff] }
  0xc8   :  { %v182_v54 = vpop.permute.xlu1 %181 }
  0xc9   :  { %v261_v57 = vsub.f32 %v182_v54, %v245_v53 }
  0xcb   :  { %v263_v60 = vmul.f32 %v261_v57, %v261_v57  ;;  %v898_v57 = vld [vmem:[%s3008_s7] sm:$0xff] }
  0xcc   :  { %v2827_v59 = vpack.c.bf16 %v899_v58, %v898_v57 }
  0xcd   :  { %v272_v62 = vpop.permute.xlu1 %271  ;;  %v265_v43 = vadd.f32 %v263_v60, %v173_v63  ;;  %v900_v60 = vld [vmem:[%s3008_s7 + $0x10] sm:$0xff] }
  0xce   :  { %v351_v0 = vsub.f32 %v272_v62, %v335_v38  ;;  %v2837_v38 = vpack.c.bf16 %v901_v61, %v900_v60 }
  0xd0   :  { %v353_v1 = vmul.f32 %v351_v0, %v351_v0 }
  0xd2   :  { %v355_v2 = vadd.f32 %v353_v1, %v265_v43 }
  0xd4   :  { %v359_v3 = vand.u32 4294967264, %v355_v2 }
  0xd6   :  { %v2774_v39 = vor.u32 %v359_v3, %v2712_v30 }
  0xd8   :  { %v725_v48 = vsel %vm709_vm6, %v2774_v39, 2147483647 }
  0xd9   :  { %v727_v4 = vshra.s32 %v725_v48, 16  ;;  %v726_v22 = vand.u32 65535, %v725_v48  ;;  %v2059_v48 = vld [vmem:[%s3007_s6] ss:$0 sm:$0xff] }
  0xdb   :  { %v729_v5 = vcvt.s32.f32 %v727_v4 }
  0xdd   :  { %730 = vmin.xlane.f32.xlu1 %v729_v5 }
  0xdf   :  { %v2223_v55 = vpop.f32.mrb[0].mxu1 }
  0xe0   :  { %v692_v56 = vpop.f32.mrb[1].mxu1 }
  0xe1   :  { %v2845_v4 = vsub.f32 %v2059_v48, %v692_v56 }
  0xf4   :  { %v2209_v10 = vpop.f32.mrb[0].mxu0 }
  0xf5   :  { %v582_v11 = vpop.f32.mrb[1].mxu0 }
  0xf6   :  { %v2778_v12 = vpack.c.bf16 %v2209_v10, %v582_v11 }
  0xf8   :  { %v2212_v14 = vpop.f32.mrb[2].mxu0  ;;  %2380 = vmatpush3.bf16.msra.mxu1 %v2778_v12 }
  0xf9   :  { %v592_v15 = vpop.f32.mrb[3].mxu0  ;;  %2381 = vmatprep.subr.bf16.mxu1 %v2530_v13 }
  0xfa   :  { %v2784_v16 = vpack.c.bf16 %v2212_v14, %v592_v15 }
  0xfc   :  { %2383 = vmatpush3.bf16.msra.mxu1 %v2784_v16  ;;  %v2215_v18 = vpop.f32.mrb[4].mxu0 }
  0xfd   :  { %2384 = vmatprep.subr.bf16.mxu1 %v2530_v13  ;;  %v602_v19 = vpop.f32.mrb[5].mxu0 }
  0xfe   :  { %v2792_v21 = vpack.c.bf16 %v2215_v18, %v602_v19 }
 0x100   :  { %2406 = vmatpush3.bf16.msra.mxu0 %v2792_v21 }
 0x101   :  { %2407 = vmatprep.subr.bf16.mxu0 %v2530_v13  ;;  %v2218_v26 = vpop.f32.mrb[6].mxu0 }
 0x102   :  { %v612_v27 = vpop.f32.mrb[7].mxu0 }
 0x103   :  { %v2796_v28 = vpack.c.bf16 %v2218_v26, %v612_v27 }
 0x105   :  { %2409 = vmatpush3.bf16.msra.mxu0 %v2796_v28 }
 0x106   :  { %2418 = vmatprep.subr.bf16.mxu0 %v2530_v13 }
 0x140   :  { %v716_v7 = vpop.xlane.xlu0 %715 }
 0x141   :  { %vm717_vm7 = vcmp.eq.f32.partialorder %v714_v24, %v716_v7  ;;  %v728_v24 = vcvt.s32.f32 %v726_v22  ;;  %v722_v29 = vcvt.f32.s32 %v716_v7 }
 0x142   :  { %v718_v9 = vsel %vm717_vm7, %v713_v8, inf }
 0x143   :  { %719 = vmin.xlane.f32.xlu0 %v718_v9  ;;  %v723_v32 = vshll.u32 %v722_v29, 16  ;;  %v2849_v9 = vsub.f32 %v2059_v48, %v2223_v55 }
 0x16a   :  { %v731_v23 = vpop.xlane.xlu1 %730 }
 0x16b   :  { %vm732_vm9 = vcmp.eq.f32.partialorder %v729_v5, %v731_v23  ;;  %v737_v44 = vcvt.f32.s32 %v731_v23 }
 0x16c   :  { %v733_v25 = vsel %vm732_vm9, %v728_v24, inf }
 0x16d   :  { %734 = vmin.xlane.f32.xlu0 %v733_v25  ;;  %v738_v45 = vshll.u32 %v737_v44, 16 }
 0x1d0   :  { %v720_v31 = vpop.xlane.xlu0 %719 }
 0x1d1   :  { %v721_v33 = vcvt.f32.s32 %v720_v31 }
 0x1d3   :  { %v724_v34 = vadd.s32 %v723_v32, %v721_v33 }
 0x1d5   :  { %v740_v35 = vand.u32 31, %v724_v34 }
 0x1d7   :  { %vm742_vm10 = vcmp.eq.s32.totalorder %v2712_v30, %v740_v35 }
 0x1d8   :  { %v2060_v36 = vsel %vm742_vm10, 1.0, %v2532_v17  ;;  %v2803_v37 = vsel %vm742_vm10, 2147483647, %v2748_v20 }
 0x1d9   :  { %2233 = vmatmul.mubr.msk.f32.vlgmr.msra.gmra.mrb[2].mxu1 %vm709_vm6, %v2060_v36  ;;  %v992_v40 = vsel %vm709_vm6, %v2803_v37, 2147483647 }
 0x1da   :  { %v994_v41 = vshra.s32 %v992_v40, 16  ;;  %2386 = vmatpush3.bf16.msra.mxu1 %v2792_v21  ;;  %2243 = vmatprep.mubr.msk.f32.mxu1 %vm2531_vm8, %v2532_v17  ;;  %v993_v62 = vand.u32 65535, %v992_v40 }
 0x1db   :  { %2387 = vmatprep.subr.bf16.mxu1 %v2530_v13 }
 0x1dc   :  { %v996_v42 = vcvt.s32.f32 %v994_v41  ;;  %v995_v0 = vcvt.s32.f32 %v993_v62 }
 0x1de   :  { %997 = vmin.xlane.f32.xlu1 %v996_v42  ;;  %2389 = vmatpush3.bf16.msra.mxu1 %v2796_v28 }
 0x1df   :  { %2391 = vmatprep.subr.bf16.mxu1 %v2827_v59 }
 0x1fa   :  { %v735_v20 = vpop.xlane.xlu0 %734 }
 0x1fb   :  { %v736_v46 = vcvt.f32.s32 %v735_v20 }
 0x1fd   :  { %v739_v47 = vadd.s32 %v738_v45, %v736_v46 }
 0x1ff   :  { %v741_v49 = vand.u32 31, %v739_v47 }
 0x201   :  { %vm743_vm11 = vcmp.eq.s32.totalorder %v2712_v30, %v741_v49 }
 0x202   :  { %v2061_v50 = vsel %vm743_vm11, 1.0, %v2532_v17  ;;  %v2816_v51 = vsel %vm743_vm11, 2147483647, %v2774_v39 }
 0x203   :  { %2244 = vmatmul.mubr.msk.f32.vlgmr.msra.gmra.mrb[4].mxu1 %vm709_vm6, %v2061_v50  ;;  %v1007_v52 = vsel %vm709_vm6, %v2816_v51, 2147483647 }
 0x204   :  { %v1009_v53 = vshra.s32 %v1007_v52, 16  ;;  %2393 = vmatpush3.bf16.msra.mxu1 %v2827_v59  ;;  %v1008_v1 = vand.u32 65535, %v1007_v52 }
 0x205   :  { %2395 = vmatprep.subr.bf16.mxu1 %v2837_v38 }
 0x206   :  { %v1011_v54 = vcvt.s32.f32 %v1009_v53  ;;  %v1010_v3 = vcvt.s32.f32 %v1008_v1 }
 0x208   :  { %1012 = vmin.xlane.f32.xlu0 %v1011_v54  ;;  %2397 = vmatpush3.bf16.msra.mxu1 %v2837_v38 }
 0x209   :  { %2398 = vmatprep.subr.bf16.mxu1 %v2530_v13 }
 0x26b   :  { %v998_v63 = vpop.xlane.xlu1 %997 }
 0x26c   :  { %vm999_vm12 = vcmp.eq.f32.partialorder %v996_v42, %v998_v63  ;;  %v1004_v18 = vcvt.f32.s32 %v998_v63 }
 0x26d   :  { %v1000_v43 = vsel %vm999_vm12, %v995_v0, inf }
 0x26e   :  { %1001 = vmin.xlane.f32.xlu1 %v1000_v43  ;;  %v1005_v22 = vshll.u32 %v1004_v18, 16 }
 0x295   :  { %v1013_v2 = vpop.xlane.xlu0 %1012 }
 0x296   :  { %vm1014_vm13 = vcmp.eq.f32.partialorder %v1011_v54, %v1013_v2  ;;  %v1019_v33 = vcvt.f32.s32 %v1013_v2 }
 0x297   :  { %v1015_v39 = vsel %vm1014_vm13, %v1010_v3, inf }
 0x298   :  { %1016 = vmin.xlane.f32.xlu0 %v1015_v39  ;;  %v1020_v35 = vshll.u32 %v1019_v33, 16 }
 0x2ac   :  { %v819_v5 = vpop.f32.mrb[2].mxu1 }
 0x2ad   :  { %v820_v6 = vadd.f32 %v819_v5, %v2845_v4  ;;  %v2234_v7 = vpop.f32.mrb[3].mxu1 }
 0x2af   :  { %v896_v8 = vmax.f32 %v820_v6, 0.0 }
 0x2b1   :  { %2254 = vmatprep.mubr.msk.f32.mxu1 %vm709_vm6, %v896_v8 }
 0x2d6   :  { %v892_v10 = vpop.f32.mrb[4].mxu1 }
 0x2d7   :  { %v893_v11 = vadd.f32 %v892_v10, %v2849_v9  ;;  %v2245_v14 = vpop.f32.mrb[5].mxu1 }
 0x2d9   :  { %v897_v15 = vmax.f32 %v893_v11, 0.0 }
 0x2db   :  { %2255 = vmatmul.mubr.msk.f32.vlgmr.msra.gmra.mrb[6].mxu1 %vm709_vm6, %v897_v15 }
 0x2dc   :  { %2400 = vmatpush3.bf16.msra.mxu1 %v2778_v12  ;;  %2265 = vmatprep.mubr.msk.f32.mxu1 %vm2531_vm8, %v2532_v17 }
 0x2dd   :  { %2401 = vmatprep.subr.bf16.mxu1 %v2530_v13 }
 0x2e0   :  { %2403 = vmatpush3.bf16.msra.mxu1 %v2784_v16 }
 0x2e1   :  { %2411 = vmatprep.subr.bf16.mxu1 %v2827_v59 }
 0x2fb   :  { %v1002_v19 = vpop.xlane.xlu1 %1001 }
 0x2fc   :  { %v1003_v23 = vcvt.f32.s32 %v1002_v19 }
 0x2fe   :  { %v1006_v24 = vadd.s32 %v1005_v22, %v1003_v23 }
 0x300   :  { %v1022_v25 = vand.u32 31, %v1006_v24 }
 0x302   :  { %vm1024_vm14 = vcmp.eq.s32.totalorder %v2712_v30, %v1022_v25 }
 0x303   :  { %v2067_v26 = vsel %vm1024_vm14, 1.0, %v2532_v17  ;;  %v2862_v27 = vsel %vm1024_vm14, 2147483647, %v2803_v37 }
 0x304   :  { %2266 = vmatmul.mubr.msk.f32.vlgmr.msra.gmra.mrb[8].mxu1 %vm709_vm6, %v2067_v26  ;;  %v1276_v29 = vsel %vm709_vm6, %v2862_v27, 2147483647 }
 0x305   :  { %v1278_v31 = vshra.s32 %v1276_v29, 16  ;;  %2413 = vmatpush3.bf16.msra.mxu1 %v2827_v59  ;;  %v1277_v46 = vand.u32 65535, %v1276_v29 }
 0x306   :  { %2415 = vmatprep.subr.bf16.mxu1 %v2837_v38 }
 0x307   :  { %v1280_v32 = vcvt.s32.f32 %v1278_v31  ;;  %v1279_v49 = vcvt.s32.f32 %v1277_v46 }
 0x309   :  { %1281 = vmin.xlane.f32.xlu1 %v1280_v32  ;;  %2417 = vmatpush3.bf16.msra.mxu1 %v2837_v38 }
 0x30a   :  { %2424 = vmatprep.subr.bf16.mxu1 %v2530_v13 }
 0x325   :  { %v1017_v34 = vpop.xlane.xlu0 %1016 }
 0x326   :  { %v1018_v36 = vcvt.f32.s32 %v1017_v34 }
 0x328   :  { %v1021_v37 = vadd.s32 %v1020_v35, %v1018_v36 }
 0x32a   :  { %v1023_v40 = vand.u32 31, %v1021_v37 }
 0x32c   :  { %vm1025_vm15 = vcmp.eq.s32.totalorder %v2712_v30, %v1023_v40 }
 0x32d   :  { %v2068_v41 = vsel %vm1025_vm15, 1.0, %v2532_v17  ;;  %v2874_v42 = vsel %vm1025_vm15, 2147483647, %v2816_v51 }
 0x32e   :  { %2277 = vmatmul.mubr.msk.f32.vlgmr.msra.gmra.mrb[8].mxu0 %vm709_vm6, %v2068_v41  ;;  %v1291_v44 = vsel %vm709_vm6, %v2874_v42, 2147483647 }
 0x32f   :  { %2420 = vmatpush3.bf16.msra.mxu0 %v2778_v12  ;;  %v1293_v20 = vshra.s32 %v1291_v44, 16  ;;  %2298 = vmatprep.mubr.msk.f32.mxu0 %vm2531_vm8, %v2532_v17  ;;  %v1292_v53 = vand.u32 65535, %v1291_v44 }
 0x330   :  { %2421 = vmatprep.subr.bf16.mxu0 %v2530_v13 }
 0x331   :  { %v1295_v45 = vcvt.s32.f32 %v1293_v20  ;;  %v1294_v55 = vcvt.s32.f32 %v1292_v53 }
 0x333   :  { %2423 = vmatpush3.bf16.msra.mxu0 %v2784_v16  ;;  %1296 = vmin.xlane.f32.xlu0 %v1295_v45 }
 0x334   :  { %2431 = vmatprep.subr.bf16.mxu0 %v2827_v59 }
 0x396   :  { %v1282_v47 = vpop.xlane.xlu1 %1281 }
 0x397   :  { %vm1283_vm1 = vcmp.eq.f32.partialorder %v1280_v32, %v1282_v47  ;;  %v1288_v1 = vcvt.f32.s32 %v1282_v47 }
 0x398   :  { %v1284_v50 = vsel %vm1283_vm1, %v1279_v49, inf }
 0x399   :  { %1285 = vmin.xlane.f32.xlu1 %v1284_v50  ;;  %v1289_v3 = vshll.u32 %v1288_v1, 16 }
 0x3ae   :  { %v2885_v51 = vpop.f32.mrb[6].mxu1 }
 0x3af   :  { %v2887_v52 = vpop.f32.mrb[7].mxu1 }
 0x3c0   :  { %v1297_v54 = vpop.xlane.xlu0 %1296 }
 0x3c1   :  { %vm1298_vm2 = vcmp.eq.f32.partialorder %v1295_v45, %v1297_v54  ;;  %v1303_v14 = vcvt.f32.s32 %v1297_v54 }
 0x3c2   :  { %v1299_v56 = vsel %vm1298_vm2, %v1294_v55, inf }
 0x3c3   :  { %1300 = vmin.xlane.f32.xlu0 %v1299_v56  ;;  %v1304_v18 = vshll.u32 %v1303_v14, 16 }
 0x3d7   :  { %v1101_v57 = vpop.f32.mrb[8].mxu1 }
 0x3d8   :  { %v1102_v58 = vadd.f32 %v1101_v57, %v2845_v4  ;;  %v2267_v60 = vpop.f32.mrb[9].mxu1 }
 0x3da   :  { %v1178_v61 = vmax.f32 %v1102_v58, 0.0 }
 0x3dc   :  { %2287 = vmatprep.mubr.msk.f32.mxu1 %vm709_vm6, %v1178_v61 }
 0x401   :  { %v1174_v62 = vpop.f32.mrb[8].mxu0 }
 0x402   :  { %v1175_v63 = vadd.f32 %v1174_v62, %v2849_v9  ;;  %v2278_v0 = vpop.f32.mrb[9].mxu0 }
 0x404   :  { %v1179_v43 = vmax.f32 %v1175_v63, 0.0 }
 0x406   :  { %2288 = vmatmul.mubr.msk.f32.vlgmr.msra.gmra.mrb[10].mxu1 %vm709_vm6, %v1179_v43 }
 0x407   :  { %2426 = vmatpush3.bf16.msra.mxu1 %v2792_v21  ;;  %2309 = vmatprep.mubr.msk.f32.mxu1 %vm2531_vm8, %v2532_v17 }
 0x408   :  { %2427 = vmatprep.subr.bf16.mxu1 %v2530_v13 }
 0x40b   :  { %2429 = vmatpush3.bf16.msra.mxu1 %v2796_v28 }
 0x40c   :  { %2438 = vmatprep.subr.bf16.mxu1 %v2530_v13 }
 0x426   :  { %v1286_v2 = vpop.xlane.xlu1 %1285 }
 0x427   :  { %v1287_v39 = vcvt.f32.s32 %v1286_v2 }
 0x429   :  { %v1290_v48 = vadd.s32 %v1289_v3, %v1287_v39 }
 0x42b   :  { %v1306_v5 = vand.u32 31, %v1290_v48 }
 0x42d   :  { %vm1308_vm3 = vcmp.eq.s32.totalorder %v2712_v30, %v1306_v5 }
 0x42e   :  { %v2074_v6 = vsel %vm1308_vm3, 1.0, %v2532_v17  ;;  %v1310_v7 = vsel %vm1308_vm3, 2147483647, %v2862_v27 }
 0x42f   :  { %2299 = vmatmul.mubr.msk.f32.vlgmr.msra.gmra.mrb[10].mxu0 %vm709_vm6, %v2074_v6  ;;  %v1560_v8 = vsel %vm709_vm6, %v1310_v7, 2147483647 }
 0x430   :  { %v1562_v10 = vshra.s32 %v1560_v8, 16  ;;  %2433 = vmatpush3.bf16.msra.mxu0 %v2827_v59  ;;  %v1561_v31 = vand.u32 65535, %v1560_v8 }
 0x431   :  { %2435 = vmatprep.subr.bf16.mxu0 %v2837_v38 }
 0x432   :  { %v1564_v11 = vcvt.s32.f32 %v1562_v10  ;;  %v1563_v33 = vcvt.s32.f32 %v1561_v31 }
 0x434   :  { %1565 = vmin.xlane.f32.xlu1 %v1564_v11  ;;  %2437 = vmatpush3.bf16.msra.mxu0 %v2837_v38 }
 0x435   :  { %2444 = vmatprep.subr.bf16.mxu0 %v2530_v13 }
 0x450   :  { %v1301_v15 = vpop.xlane.xlu0 %1300 }
 0x451   :  { %v1302_v19 = vcvt.f32.s32 %v1301_v15 }
 0x453   :  { %v1305_v22 = vadd.s32 %v1304_v18, %v1302_v19 }
 0x455   :  { %v1307_v23 = vand.u32 31, %v1305_v22 }
 0x457   :  { %vm1309_vm4 = vcmp.eq.s32.totalorder %v2712_v30, %v1307_v23 }
 0x458   :  { %v2075_v24 = vsel %vm1309_vm4, 1.0, %v2532_v17  ;;  %v1311_v25 = vsel %vm1309_vm4, 2147483647, %v2874_v42 }
 0x459   :  { %2310 = vmatmul.mubr.msk.f32.vlgmr.msra.gmra.mrb[12].mxu1 %vm709_vm6, %v2075_v24  ;;  %v1575_v26 = vsel %vm709_vm6, %v1311_v25, 2147483647 }
 0x45a   :  { %2440 = vmatpush3.bf16.msra.mxu1 %v2778_v12  ;;  %v1577_v27 = vshra.s32 %v1575_v26, 16  ;;  %2331 = vmatprep.mubr.msk.f32.mxu1 %vm2531_vm8, %v2532_v17  ;;  %v2922_v12 = vld [vmem:[%s3009_s8] ss:$0 sm:$0xff]  ;;  %v1576_v49 = vand.u32 65535, %v1575_v26 }
 0x45b   :  { %2441 = vmatprep.subr.bf16.mxu1 %v2530_v13  ;;  %v987_v35 = vadd.f32 %v2885_v51, %v2922_v12  ;;  %v1842_v26 = vld [vmem:[%s3010_s9] sm:$0xff] }
 0x45c   :  { %v1579_v29 = vcvt.s32.f32 %v1577_v27  ;;  %v1578_v53 = vcvt.s32.f32 %v1576_v49  ;;  %v1843_v27 = vld [vmem:[%s3010_s9 + $0x8] sm:$0xff] }
 0x45d   :  { %v991_v42 = vmax.f32 %v987_v35, 0.0  ;;  %v52_v35 = vld [vmem:[%s3003_s2] sm:$0xff] }
 0x45e   :  { %2443 = vmatpush3.bf16.msra.mxu1 %v2784_v16  ;;  %1580 = vmin.xlane.f32.xlu0 %v1579_v29  ;;  %v982_v16 = vadd.f32 %v2922_v12, %v2887_v52 }
 0x45f   :  { %2451 = vmatprep.subr.bf16.mxu1 %v2827_v59 }
 0x460   :  { %v990_v20 = vmax.f32 %v982_v16, 0.0  ;;  %v53_v16 = vld [vmem:[%s3003_s2 + $0x8] sm:$0xff] }
 0x4c1   :  { %v1566_v32 = vpop.xlane.xlu1 %1565 }
 0x4c2   :  { %vm1567_vm5 = vcmp.eq.f32.partialorder %v1564_v11, %v1566_v32  ;;  %v1572_v62 = vcvt.f32.s32 %v1566_v32  ;;  %v1844_v32 = vld [vmem:[%s3010_s9 + $0x10] sm:$0xff] }
 0x4c3   :  { %v1568_v34 = vsel %vm1567_vm5, %v1563_v33, inf  ;;  %v1845_v33 = vld [vmem:[%s3010_s9 + $0x18] sm:$0xff] }
 0x4c4   :  { %1569 = vmin.xlane.f32.xlu1 %v1568_v34  ;;  %v1573_v0 = vshll.u32 %v1572_v62, 16  ;;  %v2466_v34 = vpack.c.bf16 %v1845_v33, %v1844_v32 }
 0x4d9   :  { %v2289_v36 = vpop.f32.mrb[10].mxu1 }
 0x4da   :  { %v1269_v37 = vadd.f32 %v2289_v36, %v2922_v12  ;;  %v1263_v40 = vpop.f32.mrb[11].mxu1 }
 0x4db   :  { %v1264_v41 = vadd.f32 %v2922_v12, %v1263_v40 }
 0x4dc   :  { %v1273_v44 = vmax.f32 %v1269_v37, 0.0 }
 0x4dd   :  { %v1272_v45 = vmax.f32 %v1264_v41, 0.0 }
 0x4de   :  { %v1275_v46 = vmax.f32 %v991_v42, %v1273_v44 }
 0x4df   :  { %v1274_v47 = vmax.f32 %v990_v20, %v1272_v45 }
 0x4eb   :  { %v1581_v50 = vpop.xlane.xlu0 %1580 }
 0x4ec   :  { %vm1582_vm7 = vcmp.eq.f32.partialorder %v1579_v29, %v1581_v50  ;;  %v1846_v29 = vld [vmem:[%s3011_s10] sm:$0xff] }
 0x4ed   :  { %v1583_v51 = vsel %vm1582_vm7, %v1578_v53, inf }
 0x4ee   :  { %1584 = vmin.xlane.f32.xlu0 %v1583_v51 }
 0x502   :  { %v1385_v54 = vpop.f32.mrb[10].mxu0 }
 0x503   :  { %v1386_v52 = vadd.f32 %v1385_v54, %v2845_v4  ;;  %v2300_v55 = vpop.f32.mrb[11].mxu0 }
 0x505   :  { %v1462_v56 = vmax.f32 %v1386_v52, 0.0 }
 0x507   :  { %2320 = vmatprep.mubr.msk.f32.mxu0 %vm709_vm6, %v1462_v56 }
 0x52c   :  { %v1458_v57 = vpop.f32.mrb[12].mxu1 }
 0x52d   :  { %v1459_v58 = vadd.f32 %v1458_v57, %v2849_v9  ;;  %v2311_v60 = vpop.f32.mrb[13].mxu1 }
 0x52f   :  { %v1463_v61 = vmax.f32 %v1459_v58, 0.0 }
 0x531   :  { %2321 = vmatmul.mubr.msk.f32.vlgmr.msra.gmra.mrb[12].mxu0 %vm709_vm6, %v1463_v61 }
 0x532   :  { %2446 = vmatpush3.bf16.msra.mxu0 %v2792_v21  ;;  %2342 = vmatprep.mubr.msk.f32.mxu0 %vm2531_vm8, %v2532_v17 }
 0x533   :  { %2447 = vmatprep.subr.bf16.mxu0 %v2530_v13  ;;  %v1587_v13 = vcvt.f32.s32 %v1581_v50  ;;  %v2092_v50 = vld [vmem:[%s3012_s11] ss:$0 sm:$0xff] }
 0x536   :  { %2449 = vmatpush3.bf16.msra.mxu0 %v2796_v28  ;;  %v1588_v28 = vshll.u32 %v1587_v13, 16 }
 0x551   :  { %v1570_v63 = vpop.xlane.xlu1 %1569 }
 0x552   :  { %v1571_v43 = vcvt.f32.s32 %v1570_v63 }
 0x554   :  { %v1574_v1 = vadd.s32 %v1573_v0, %v1571_v43 }
 0x556   :  { %v1590_v2 = vand.u32 31, %v1574_v1 }
 0x558   :  { %vm1592_vm9 = vcmp.eq.s32.totalorder %v2712_v30, %v1590_v2 }
 0x559   :  { %v2081_v3 = vsel %vm1592_vm9, 1.0, %v2532_v17 }
 0x55a   :  { %2332 = vmatmul.mubr.msk.f32.vlgmr.msra.gmra.mrb[14].mxu1 %vm709_vm6, %v2081_v3 }
 0x55b   :  { %2453 = vmatpush3.bf16.msra.mxu1 %v2827_v59 }
 0x55c   :  { %2455 = vmatprep.subr.bf16.mxu1 %v2837_v38 }
 0x55f   :  { %2457 = vmatpush3.bf16.msra.mxu1 %v2837_v38 }
 0x57b   :  { %v1585_v21 = vpop.xlane.xlu0 %1584 }
 0x57c   :  { %v1586_v39 = vcvt.f32.s32 %v1585_v21 }
 0x57e   :  { %v1589_v48 = vadd.s32 %v1588_v28, %v1586_v39 }
 0x580   :  { %v1591_v5 = vand.u32 31, %v1589_v48 }
 0x582   :  { %vm1593_vm8 = vcmp.eq.s32.totalorder %v2712_v30, %v1591_v5 }
 0x583   :  { %v2082_v6 = vsel %vm1593_vm8, 1.0, %v2532_v17 }
 0x584   :  { %2343 = vmatmul.mubr.msk.f32.vlgmr.msra.gmra.mrb[14].mxu0 %vm709_vm6, %v2082_v6 }
 0x604   :  { %v2322_v7 = vpop.f32.mrb[12].mxu0 }
 0x605   :  { %v1553_v8 = vadd.f32 %v2322_v7, %v2922_v12  ;;  %v1547_v59 = vpop.f32.mrb[13].mxu0 }
 0x606   :  { %v1548_v10 = vadd.f32 %v2922_v12, %v1547_v59 }
 0x607   :  { %v1557_v11 = vmax.f32 %v1553_v8, 0.0 }
 0x608   :  { %v1556_v38 = vmax.f32 %v1548_v10, 0.0 }
 0x609   :  { %v1559_v14 = vmax.f32 %v1275_v46, %v1557_v11 }
 0x60a   :  { %v1558_v15 = vmax.f32 %v1274_v47, %v1556_v38 }
 0x62d   :  { %v1667_v18 = vpop.f32.mrb[14].mxu1 }
 0x62e   :  { %v1668_v19 = vadd.f32 %v1667_v18, %v2845_v4  ;;  %v2333_v22 = vpop.f32.mrb[15].mxu1  ;;  %v2462_v4 = vpack.c.bf16 %v1843_v27, %v1842_v26 }
 0x630   :  { %v1744_v23 = vmax.f32 %v1668_v19, 0.0  ;;  %2463 = vmatprep.subr.bf16.mxu0 %v2462_v4 }
 0x631   :  { %2465 = vmatpush3.bf16.msra.mxu0 %v2462_v4 }
 0x632   :  { %2353 = vmatprep.mubr.msk.f32.mxu1 %vm709_vm6, %v1744_v23  ;;  %2467 = vmatprep.subr.bf16.mxu0 %v2466_v34 }
 0x635   :  { %2469 = vmatpush3.bf16.msra.mxu0 %v2466_v34 }
 0x657   :  { %v1740_v30 = vpop.f32.mrb[14].mxu0 }
 0x658   :  { %v1741_v17 = vadd.f32 %v1740_v30, %v2849_v9  ;;  %v2344_v24 = vpop.f32.mrb[15].mxu0  ;;  %v1847_v9 = vld [vmem:[%s3011_s10 + $0x8] sm:$0xff] }
 0x659   :  { %v2458_v31 = vpack.c.bf16 %v1847_v9, %v1846_v29 }
 0x65a   :  { %v1745_v25 = vmax.f32 %v1741_v17, 0.0 }
 0x65b   :  { %2459 = vmatprep.subr.bf16.mxu1 %v2458_v31 }
 0x65c   :  { %2354 = vmatmul.mubr.msk.f32.vlgmr.msra.gmra.mrb[16].mxu1 %vm709_vm6, %v1745_v25 }
 0x65d   :  { %2461 = vmatpush3.bf16.msra.mxu1 %v2458_v31  ;;  %2360 = vmatprep.mubr.msk.f32.mxu1 %vm365_vm0, %v52_v35 }
 0x660   :  { %2361 = vmatmul.mubr.msk.f32.vlgmr.msra.gmra.mrb[18].mxu1 %vm365_vm0, %v53_v16 }
 0x72f   :  { %v2355_v36 = vpop.f32.mrb[16].mxu1 }
 0x730   :  { %v1835_v37 = vadd.f32 %v2355_v36, %v2922_v12  ;;  %v1829_v40 = vpop.f32.mrb[17].mxu1 }
 0x731   :  { %v1830_v41 = vadd.f32 %v2922_v12, %v1829_v40 }
 0x732   :  { %v1839_v42 = vmax.f32 %v1835_v37, 0.0 }
 0x733   :  { %v1838_v44 = vmax.f32 %v1830_v41, 0.0  ;;  %v2362_v46 = vpop.f32.mrb[18].mxu1 }
 0x734   :  { %v1841_v20 = vmax.f32 %v1559_v14, %v1839_v42  ;;  %v1920_v47 = vpop.f32.mrb[19].mxu1 }
 0x735   :  { %v1840_v45 = vmax.f32 %v1558_v15, %v1838_v44 }
 0x737   :  { %2371 = vmatprep.mubr.msk.f32.mxu0 %vm709_vm6, %v1840_v45 }
 0x738   :  { %2372 = vmatmul.mubr.msk.f32.vlgmr.msra.gmra.mrb[16].mxu0 %vm709_vm6, %v1841_v20 }
 0x80b   :  { %v2373_v49 = vpop.f32.mrb[16].mxu0 }
 0x80c   :  { %v2007_v53 = vadd.f32 %v2373_v49, %v2362_v46  ;;  %v2001_v51 = vpop.f32.mrb[17].mxu0 }
 0x80d   :  { %v2002_v54 = vadd.f32 %v2001_v51, %v1920_v47 }
 0x80e   :  { %v2018_v52 = vadd.f32 %v2092_v50, %v2007_v53 }
 0x80f   :  { %v2017_v12 = vadd.f32 %v2092_v50, %v2002_v54 }
 0x810   :  { %v2020_v55 = vmax.f32 %v2018_v52, 0.0 }
 0x811   :  { %v2019_v56 = vmax.f32 %v2017_v12, 0.0 }
 0x812   :  { %2022 = vst.msk [vmem:[#allocation2 + $0x8] sm:$0xff] %vm709_vm6, %v2020_v55 }
 0x813   :  { %2021 = vst.msk [vmem:[#allocation2] sm:$0xff] %vm709_vm6, %v2019_v56 }
 0x814   :  { %2514 = shalt.err (!%p2511_p4)
}
 0x815   :  { %s2515_s25 = scalar_lea.hbm %s3013_s12, 256 }
 0x816   :  { %p2516_p5 = scmp.ne.s32.totalorder %s3013_s12, %s2515_s25  ;;  %p2519_p6 = scmp.lt.u32.totalorder %s2515_s25, %s3013_s12 }
 0x818   :  { %p2521_p7 = pnand %p2519_p6, %p2516_p5 }
 0x81a   :  { %2524 = shalt.err (!%p2521_p7)
}
 0x81b   :  { %s2534_s6 = smov 128   ;;  %s2535_s29 = smov 8  }
 0x81c   :  { %2034 = dma.vmem_to_hbm [thread:$0]  %s2029_s23, 256, %s3013_s12, [#allocation3], %s2534_s6, %s2534_s6, %s2535_s29  }
 0x81d   :  { %2525 = dma.done.wait [#allocation3], 256  }
 0x81e   :  { %2526 = vsyncadd [#allocation3], 4294967040 }
 0x81f   :  { %2038 = vsyncpa [#allocation3], 1 }

</bundles_post_ra>
